<compile_context>
chip_gen: v6e
topology: v6e:2x2x1
jax: 0.10.0
libtpu: 0.0.40
codegen_flags: <defaults>
</compile_context>

<pallas_src>
import functools

import jax
import jax.numpy as jnp
from jax import lax
from jax.experimental import pallas as pl
from jax.experimental.pallas import tpu as pltpu


def _dgi_gcn_kernel(adj_ref, x_ref, o_ref, *, apply_relu: bool):
    # adj_ref: (TN, N) int8  dst-src adjacency stripe (rows = this tile's dst nodes)
    # x_ref:   (N, F)  bf16  pre-normalized source features (grid-invariant, resident)
    # o_ref:   (TN, F) f32
    adj_f32 = adj_ref[...].astype(jnp.float32)

    # dst-side norm: in_degrees.clamp(min=1) ** -0.5, computed from the stripe
    # already in VMEM (XLU reduce + EUP rsqrt -> free slots under the MXU).
    deg_in = jnp.sum(adj_f32, axis=1, keepdims=True)            # (TN, 1)
    norm_dst = lax.rsqrt(jnp.maximum(deg_in, 1.0))

    # Neighborhood aggregation on the MXU: bf16 operands, f32 accumulation.
    h = jnp.dot(adj_f32.astype(jnp.bfloat16), x_ref[...],
                preferred_element_type=jnp.float32)             # (TN, F)

    h = h * norm_dst
    if apply_relu:
        h = jnp.maximum(h, 0.0)

    o_ref[...] = h.astype(o_ref.dtype)


def dgi_encoder_forward(adj, features, *, n_hidden: int, corrupt: bool = False,
                        key=None, tile_n: int = 256):
    """DGIEncoder.forward(features, corrupt) with GraphConv(weight=False, norm='both').

    adj:      [N, N] dense dst-src adjacency (adj[v, u] = 1 iff edge u -> v).
              Pass it as int8 to avoid any f32 N^2 traffic; other dtypes are
              cast to int8 once here.
    features: [N, F] f32 node features
    """
    N, F = features.shape

    if corrupt:
        # torch.randperm(num_nodes) applied to the feature rows.
        # TODO(synk): PyTorch draws from the global RNG; an explicit JAX key is used here.
        perm = jax.random.permutation(key, N)
        features = features[perm]

    # Adjacency entries are 0/1 -> exact in int8 (and in bf16 after the in-kernel upcast).
    adj_i8 = adj if adj.dtype == jnp.int8 else adj.astype(jnp.int8)

    # ---- grid-invariant feature work, done ONCE (not per grid step) ----------
    # GraphConv as written applies the src-side out-degree norm only on the
    # in_feats > out_feats branch (weight=False -> no feature projection either way).
    # TODO(synk): real DGL GraphConv(norm='both') applies the src norm
    #             unconditionally; this mirrors the provided source verbatim.
    apply_src_norm = F > n_hidden
    feat = features
    if apply_src_norm:
        deg_out = jnp.sum(adj_i8.astype(jnp.float32), axis=0).reshape(N, 1)
        feat = feat * lax.rsqrt(jnp.maximum(deg_out, 1.0))
    feat_bf16 = feat.astype(jnp.bfloat16)
    # --------------------------------------------------------------------------

    tn = min(tile_n, N)
    grid = (pl.cdiv(N, tn),)

    # Resident footprint: bf16 feature slab + double-buffered int8 adjacency
    # stripes + double-buffered f32 output tiles (plus compiler slack).
    vmem_needed = N * F * 2 + 2 * tn * N * 1 + 2 * tn * F * 4
    vmem_limit = int(min(max(2 * vmem_needed + (1 << 20), 32 * 1024 * 1024),
                         60 * 1024 * 1024))

    kernel = functools.partial(_dgi_gcn_kernel, apply_relu=True)  # activation = ReLU
    # TODO(synk): learnable activations (e.g. nn.PReLU) would need an extra slope input.

    return pl.pallas_call(
        kernel,
        out_shape=jax.ShapeDtypeStruct((N, F), features.dtype),
        grid_spec=pltpu.PrefetchScalarGridSpec(
            num_scalar_prefetch=0,
            grid=grid,
            in_specs=[
                # streamed int8 adjacency stripe for this dst tile.
                # TODO(synk): sweep pipeline_mode=pl.Buffered(3) here if an xprof
                #             trace shows the stripe DMA exposed (after VMEM re-budget).
                pl.BlockSpec((tn, N), lambda i: (i, 0)),
                # pre-normalized bf16 src features, grid-invariant -> stays resident.
                pl.BlockSpec((N, F), lambda i: (0, 0)),
            ],
            out_specs=pl.BlockSpec((tn, F), lambda i: (i, 0)),
        ),
        compiler_params=pltpu.CompilerParams(
            dimension_semantics=("parallel",),
            vmem_limit_bytes=vmem_limit,
        ),
    )(adj_i8, feat_bf16)


def _reference(adj_f32, features, *, n_hidden: int, corrupt: bool = False, key=None):
    """Pure-JAX reference mirroring the provided PyTorch DGIEncoder forward (f32)."""
    N, F = features.shape
    if corrupt:
        perm = jax.random.permutation(key, N)
        features = features[perm]
    deg_in = jnp.maximum(jnp.sum(adj_f32, axis=1, keepdims=True), 1.0)
    deg_out = jnp.maximum(jnp.sum(adj_f32, axis=0).reshape(N, 1), 1.0)
    feat = features
    if F > n_hidden:
        feat = feat * (deg_out ** -0.5)
    rst = jnp.dot(adj_f32, feat, precision=lax.Precision.HIGHEST)
    rst = rst * (deg_in ** -0.5)
    return jnp.maximum(rst, 0.0)


if __name__ == "__main__":
    # in_feats > n_hidden -> both-sided norm path (matches the provided source's branch).
    N, F_IN, N_HIDDEN = 1024, 128, 64

    key = jax.random.PRNGKey(0)
    k_adj, k_feat, k_perm = jax.random.split(key, 3)

    # Random directed graph (p = 0.05) with self-loops, materialized directly as
    # int8 dst-src adjacency (no f32 N^2 copy anywhere on the kernel path).
    adj_bool = jax.random.uniform(k_adj, (N, N)) < 0.05
    adj_i8 = jnp.maximum(adj_bool.astype(jnp.int8), jnp.eye(N, dtype=jnp.int8))
    adj_f32 = adj_i8.astype(jnp.float32)  # reference only

    features = jax.random.normal(k_feat, (N, F_IN), jnp.float32)

    # corrupt=False (default DGIEncoder path)
    out = dgi_encoder_forward(adj_i8, features, n_hidden=N_HIDDEN)
    out = jax.block_until_ready(out)
    ref = _reference(adj_f32, features, n_hidden=N_HIDDEN)
    assert out.shape == (N, F_IN)
    assert jnp.allclose(out, ref, atol=2e-2, rtol=2e-2), "mismatch vs reference (corrupt=False)"

    # corrupt=True path (random row permutation of the features, then the same GCN)
    out_c = dgi_encoder_forward(adj_i8, features, n_hidden=N_HIDDEN, corrupt=True, key=k_perm)
    out_c = jax.block_until_ready(out_c)
    ref_c = _reference(adj_f32, features, n_hidden=N_HIDDEN, corrupt=True, key=k_perm)
    assert jnp.allclose(out_c, ref_c, atol=2e-2, rtol=2e-2), "mismatch vs reference (corrupt=True)"

    print("KERNEL_OK")
</pallas_src>

<mosaic_0001>
module attributes {stable_mosaic.version = 11 : i64} {
  func.func @_dgi_gcn_kernel(%arg0: i32, %arg1: memref<256x1024xi8, #tpu.memory_space<vmem>>, %arg2: memref<1024x128xbf16, #tpu.memory_space<vmem>>, %arg3: memref<256x128xf32, #tpu.memory_space<vmem>>) attributes {dimension_semantics = [#tpu.dimension_semantics<parallel>], iteration_bounds = array<i64: 4>, scalar_prefetch = 0 : i64, scratch_operands = 0 : i64, tpu.core_type = #tpu.core_type<tc>, window_params = [{transform_indices = @transform_0, window_bounds = array<i64: 256, 1024>}, {pipeline_mode = #tpu.pipeline_mode<synchronous>, transform_indices = @transform_1, window_bounds = array<i64: 1024, 128>}, {transform_indices = @transform_2, window_bounds = array<i64: 256, 128>}]} {
    %c0 = arith.constant 0 : index
    %c0_0 = arith.constant 0 : index
    %0 = vector.load %arg1[%c0, %c0_0] : memref<256x1024xi8, #tpu.memory_space<vmem>>, vector<256x1024xi8>
    %1 = arith.sitofp %0 : vector<256x1024xi8> to vector<256x1024xf32>
    %cst = arith.constant dense<0.000000e+00> : vector<256xf32>
    %2 = vector.multi_reduction <add>, %1, %cst [1] : vector<256x1024xf32> to vector<256xf32>
    %3 = vector.shape_cast %2 : vector<256xf32> to vector<256x1xf32>
    %cst_1 = arith.constant 1.000000e+00 : f32
    %4 = vector.broadcast %cst_1 : f32 to vector<256x1xf32>
    %5 = arith.maximumf %3, %4 : vector<256x1xf32>
    %6 = math.rsqrt %5 : vector<256x1xf32>
    %7 = arith.truncf %1 : vector<256x1024xf32> to vector<256x1024xbf16>
    %c0_2 = arith.constant 0 : index
    %c0_3 = arith.constant 0 : index
    %8 = vector.load %arg2[%c0_2, %c0_3] : memref<1024x128xbf16, #tpu.memory_space<vmem>>, vector<1024x128xbf16>
    %cst_4 = arith.constant dense<0.000000e+00> : vector<256x128xf32>
    %9 = tpu.matmul %7, %8, %cst_4 {dimension_numbers = #tpu.dot_dimension_numbers<[1], [0], [0], [1], [0, 0, 1, 1], [], []>} : vector<256x1024xbf16>, vector<1024x128xbf16>, vector<256x128xf32> -> vector<256x128xf32>
    %10 = vector.broadcast %6 : vector<256x1xf32> to vector<256x128xf32>
    %11 = arith.mulf %9, %10 : vector<256x128xf32>
    %cst_5 = arith.constant 0.000000e+00 : f32
    %12 = vector.broadcast %cst_5 : f32 to vector<256x128xf32>
    %13 = arith.maximumf %11, %12 : vector<256x128xf32>
    %c0_6 = arith.constant 0 : index
    %c0_7 = arith.constant 0 : index
    %14 = vector.load %arg3[%c0_6, %c0_7] : memref<256x128xf32, #tpu.memory_space<vmem>>, vector<256x128xf32>
    tpu.vector_store %arg3[%c0_6, %c0_7], %13 {strides = array<i32>} : memref<256x128xf32, #tpu.memory_space<vmem>>, vector<256x128xf32>,
    return
  }
  func.func @transform_0(%arg0: i32) -> (i32, i32) {
    %c0_i32 = arith.constant 0 : i32
    %c0_i32_0 = arith.constant 0 : i32
    return %arg0, %c0_i32 : i32, i32
  }
  func.func @transform_1(%arg0: i32) -> (i32, i32) {
    %c0_i32 = arith.constant 0 : i32
    %c0_i32_0 = arith.constant 0 : i32
    %c0_i32_1 = arith.constant 0 : i32
    return %c0_i32, %c0_i32_0 : i32, i32
  }
  func.func @transform_2(%arg0: i32) -> (i32, i32) {
    %c0_i32 = arith.constant 0 : i32
    %c0_i32_0 = arith.constant 0 : i32
    return %arg0, %c0_i32 : i32, i32
  }
}

</mosaic_0001>

<bundles_post_ra>
// kernel: tpu_custom_call.1
= control target key start
LH: loop header
LB: loop body
LE: loop exit
PB: predicated region body
PF: predicated region fallthrough
CT: control target
= control target key end

     0   :  { %7 = vsyncpa [#allocation3], 0  ;;  %s4637_s0 = inlined_call_operand.hbm [shape: s8[1024,1024], index: 0, kind: input, shape index: {}]   ;;  %s4638_s1 = inlined_call_operand.hbm [shape: bf16[1024,128], index: 1, kind: input, shape index: {}]   ;;  %s4639_s2 = inlined_call_operand.hbm [shape: f32[1024,128], index: 2, kind: output, shape index: {}]  }
   0x1   :  { %9 = vsyncpa [#allocation3 + $0x1], 0 }
   0x2   :  { %10 = vsyncpa [#allocation6], 0 }
   0x3   :  { %11 = vsyncpa [#allocation4], 0 }
   0x4   :  { %13 = vsyncpa [#allocation4 + $0x1], 0  ;;  %s3477_s9 = smov 0   ;;  %s3479_s10 = smov 0  }
   0x5   :  { %s3481_s11 = smov 0   ;;  %s3483_s12 = smov 0  }
   0x6 LB: > { %s3498_s13 = sadd.s32 4294967295, %s3452_s12   ;;  %s2586_s14 = sadd.s32 4294967294, %s3452_s12   ;;  %s3452_s12 = sphi %s3483_s12, %s4786_s12   ;;  %s3448_s11 = sphi %s3481_s11, %s4785_s11   ;;  %s3444_s10 = sphi %s3479_s10, %s4784_s10   ;;  %s3440_s9 = sphi %s3477_s9, %s4783_s9  }
   0x7   : > { %p39_p0 = scmp.ne.s32.totalorder %s3444_s10, %s3440_s9  ;;  %p4640_p1 = scmp.eq.s32.totalorder %s3498_s13, 0 }
   0x8   : > { %p90_p3 = scmp.eq.s32.totalorder %s2586_s14, 3  ;;  %p2587_p5 = scmp.ge.s32.totalorder %s3452_s12, 1 }
   0x9   : > { %p3507_p4 = por %p4640_p1, %p39_p0  ;;  %p97_p7 = scmp.lt.s32.totalorder %s3452_s12, 5 }
   0xa   : > { %p3512_p6 = por %p90_p3, %p39_p0  ;;  %s3454_s18 = smov [#allocation5]  }
   0xb   : > { %s4661_s15 = scalar_select %p3507_p4, 1, 0 }
   0xc   : > { %s4662_s16 = scalar_select %p3512_p6, 1, 0 }
   0xd   : > { %p3517_p8 = pnand %p2587_p5, %p97_p7  ;;  %s109_s19 = sshll.u32 %s3454_s18, 4  ;;  %s110_s19 = int_to_ptr.vmem [resolvable:$true] %s109_s19 }
   0xe   : > { %s3530_s21 = sadd.s32 1, %s3452_s12   ;;  %s26_s22 = sadd.s32 1, %s3448_s11 }
   0xf   : > { %s4663_s17 = scalar_select %p3517_p8, 1, 0 }
  0x10   : > { %p3126_p9 = pneg %p3517_p8  ;;  %s23_s23 = ssub.s32 %s3452_s12, %s3530_s21 }
  0x11   : > { %s3341_s24 = scalar_lea.vmem %s110_s19, 8192  ;;  %p3349_p3 = scmp.lt.s32.totalorder %s110_s19, %s110_s19 }
  0x12   : > { %p3525_p10 = pnand %p3126_p9, %p4640_p1  ;;  %p3342_p12 = scmp.ne.s32.totalorder %s110_s19, %s3341_s24 }
  0x13   : > { %p3350_p5 = scmp.lt.s32.totalorder %s3341_s24, %s3341_s24 }
  0x14   : > { %p3332_p11 = pneg %p3525_p10 }
  0x15   : > { %p3351_p7 = por %p3350_p5, %p3349_p3 }
  0x16   : > { %p3344_p13 = pnand %p3342_p12, %p3332_p11 }
  0x18   : > { %p3345_p0 = pneg %p3344_p13 }
  0x1a   : > { %p3352_p2 = pnand %p3351_p7, %p3345_p0 }
  0x1c   : > { %3355 = shalt.err (!%p3352_p2)
}
  0x1d   : > { %s3455_s25 = smov 64   ;;  %s3456_s26 = smov 4  }
  0x1e   : > { %3129 = dma.hbm_to_vmem [thread:$0]  (!%p3525_p10), %s4638_s1, 8192, %s110_s19, [#allocation6], %s3455_s25, %s3455_s25, %s3456_s26  }
  0x1f   : > { %p24_p9 = scmp.eq.s32.totalorder %s23_s23, 0  ;;  %p33_p2 = scmp.ne.s32.totalorder %s3448_s11, %s3444_s10 }
  0x20   : > { %p34_p11 = scmp.eq.s32.totalorder %s3452_s12, 0  ;;  %p3139_p12 = scmp.lt.s32.totalorder %s3452_s12, 4 }
  0x21   : > { %s3549_s29 = scalar_select %p24_p9, %s3448_s11, %s26_s22  }
  0x22   : > { %p35_p13 = por %p34_p11, %p33_p2  ;;  %p4665_p0 = scmp.eq.s32.totalorder %s3498_s13, 3 }
  0x23   : > { %s123_s3 = sand.u32 1, %s3448_s11   ;;  %s2668_s4 = sshll.u32 %s3452_s12, 13 }
  0x24   : > { %p3553_p3 = por %p4665_p0, %p33_p2  ;;  %s2590_s5 = sshll.u32 %s123_s3, 9 }
  0x25   : > { %s3562_s8 = scalar_lea.hbm %s4637_s0, %s2668_s4  ;;  %s127_s14 = scalar_lea.vmem [#allocation2], %s2590_s5 }
  0x26   : > { %s4666_s30 = scalar_select %p3553_p3, 1, 0 }
  0x27   : > { %s135_s18 = sshll.u32 %s127_s14, 4  ;;  %p3564_p10 = pnand %p3139_p12, %p35_p13  ;;  %s3568_s18 = int_to_ptr.vmem [resolvable:$true] %s135_s18 }
  0x28   : > { %s3570_s20 = scalar_lea.sflag [#allocation3], %s123_s3  ;;  %s3356_s22 = scalar_lea.hbm %s3562_s8, 8192 }
  0x29   : > { %p3357_p5 = scmp.ne.s32.totalorder %s3562_s8, %s3356_s22  ;;  %p3358_p7 = pneg %p3564_p10 }
  0x2a   : > { %s3361_s26 = scalar_lea.hbm %s4637_s0, 32768  ;;  %p3362_p11 = scmp.lt.s32.totalorder %s3562_s8, %s4637_s0 }
  0x2b   : > { %p3359_p9 = pnand %p3358_p7, %p3357_p5  ;;  %p3363_p12 = scmp.lt.s32.totalorder %s3361_s26, %s3356_s22 }
  0x2d   : > { %p3360_p2 = pneg %p3359_p9  ;;  %p3364_p13 = por %p3363_p12, %p3362_p11 }
  0x2f   : > { %p3365_p0 = pnand %p3364_p13, %p3360_p2 }
  0x31   : > { %3368 = shalt.err (!%p3365_p0)
}
  0x32   : > { %s3369_s3 = scalar_lea.vmem %s3568_s18, 8192  ;;  %s3457_s4 = smov [#allocation2]  }
  0x33   : > { %p3370_p1 = scmp.ne.s32.totalorder %s3568_s18, %s3369_s3  ;;  %s3374_s5 = sshll.u32 %s3457_s4, 4  ;;  %s3375_s5 = int_to_ptr.vmem [resolvable:$false] %s3374_s5 }
  0x34   : > { %s3376_s6 = scalar_lea.vmem %s3375_s5, 16384  ;;  %p3377_p9 = scmp.lt.s32.totalorder %s3568_s18, %s3375_s5 }
  0x35   : > { %p3372_p6 = pnand %p3370_p1, %p3358_p7  ;;  %p3378_p3 = scmp.lt.s32.totalorder %s3376_s6, %s3369_s3 }
  0x37   : > { %p3373_p5 = pneg %p3372_p6  ;;  %p3379_p4 = por %p3378_p3, %p3377_p9 }
  0x39   : > { %p3380_p8 = pnand %p3379_p4, %p3373_p5 }
  0x3b   : > { %3383 = shalt.err (!%p3380_p8)
}
  0x3c   : > { %s3458_s7 = smov 1024   ;;  %p4668_p1 = scmp.ne.s32.totalorder %s4663_s17, 0 }
  0x3d   : > { %3133 = dma.hbm_to_vmem [thread:$0]  (!%p3564_p10), %s3562_s8, 8192, %s3568_s18, %s3570_s20, %s3458_s7, %s3458_s7, %s3455_s25  }
  0x3e   : > { %147 = sbr.rel (%p4668_p1) target bundleno = 591 (0x24f), region = 28 }
  0x43   : > { %s3595_s14 = sand.u32 1, %s3444_s10   ;;  %p4669_p4 = scmp.ne.s32.totalorder %s4661_s15, 0 }
  0x44   : > { %s2595_s22 = sshll.u32 %s3595_s14, 9  ;;  %s150_s23 = scalar_lea.sflag [#allocation3], %s3595_s14 }
  0x45   : > { %s3599_s24 = scalar_lea.vmem [#allocation2], %s2595_s22 }
  0x46   : > { %3427 = dma.done.wait (%p4669_p4), %s150_s23, 8192  }
  0x47   : > { %3429 = vsyncadd (%p4669_p4), %s150_s23, 4294959104  ;;  %p4670_p6 = scmp.eq.s32.totalorder %s3498_s13, 0 }
  0x49   : > { %3431 = dma.done.wait (%p4670_p6), [#allocation6], 8192   ;;  %p4671_p8 = pmov %p4670_p6 }
  0x4a   : > { %v3180_v0 = vld [vmem:[#allocation5 + $0x78] sm:$0xff]   ;;  %v3184_v4 = vld [vmem:[#allocation5 + $0x70] sm:$0xff]   ;;  %v3188_v8 = vld [vmem:[#allocation5 + $0x68] sm:$0xff]   ;;  %s2597_s15 = sshll.u32 %s3595_s14, 8  ;;  %s2669_s25 = sshll.u32 %s3498_s13, 12 }
  0x4b   : > { %3433 = vsyncadd (%p4671_p8), [#allocation6], 4294959104  ;;  %v3181_v1 = vld [vmem:[#allocation5 + $0xf8] sm:$0xff]   ;;  %2670 = vmatprep.subr.bf16.mxu0 %v3180_v0  ;;  %v3185_v5 = vld [vmem:[#allocation5 + $0xf0] sm:$0xff]   ;;  %s4524_s17 = scalar_lea.vmem [#allocation7], %s2597_s15  ;;  %s4592_s20 = scalar_lea.hbm %s4639_s2, %s2669_s25 }
  0x4c   : > { %v3182_v2 = vld [vmem:[#allocation5 + $0x38] sm:$0xff]   ;;  %2782 = vmatprep.subr.bf16.mxu1 %v3181_v1  ;;  %v3186_v6 = vld [vmem:[#allocation5 + $0x30] sm:$0xff]   ;;  %v3189_v9 = vld [vmem:[#allocation5 + $0xe8] sm:$0xff]   ;;  %s2503_s8 = sshll.u32 %s4524_s17, 4  ;;  %s2490_s26 = scalar_lea.sflag [#allocation4], %s3595_s14  ;;  %s4594_s8 = int_to_ptr.vmem [resolvable:$true] %s2503_s8 }
  0x4d   : > { %v3183_v3 = vld [vmem:[#allocation5 + $0xb8] sm:$0xff]   ;;  %2671 = vmatpush3.bf16.msra.mxu0 %v3182_v2  ;;  %v3187_v7 = vld [vmem:[#allocation5 + $0xb0] sm:$0xff]   ;;  %v3190_v10 = vld [vmem:[#allocation5 + $0x28] sm:$0xff]   ;;  %s3384_s27 = scalar_lea.vmem %s4594_s8, 4096  ;;  %p4781_p10 = scmp.ne.s32.totalorder %s4666_s30, 0 }
  0x4e   : > { %2783 = vmatpush3.bf16.msra.mxu1 %v3183_v3  ;;  %2672 = vmatprep.subr.bf16.mxu0 %v3184_v4  ;;  %v3191_v11 = vld [vmem:[#allocation5 + $0xa8] sm:$0xff]   ;;  %v3192_v12 = vld [vmem:[#allocation5 + $0x60] sm:$0xff]   ;;  %v3196_v16 = vld [vmem:[#allocation5 + $0x58] sm:$0xff]   ;;  %p3385_p3 = scmp.ne.s32.totalorder %s4594_s8, %s3384_s27  ;;  %s3459_s13 = smov [#allocation7]  }
  0x4f   : > { %2784 = vmatprep.subr.bf16.mxu1 %v3185_v5  ;;  %v3193_v13 = vld [vmem:[#allocation5 + $0xe0] sm:$0xff]   ;;  %v3197_v17 = vld [vmem:[#allocation5 + $0xd8] sm:$0xff]   ;;  %v3200_v20 = vld [vmem:[#allocation5 + $0x50] sm:$0xff]   ;;  %s3388_s28 = sshll.u32 %s3459_s13, 4  ;;  %s3389_s28 = int_to_ptr.vmem [resolvable:$false] %s3388_s28 }
  0x50   : > { %v3194_v14 = vld [vmem:[#allocation5 + $0x20] sm:$0xff]   ;;  %v3198_v18 = vld [vmem:[#allocation5 + $0x18] sm:$0xff]   ;;  %v3201_v21 = vld [vmem:[#allocation5 + $0xd0] sm:$0xff]   ;;  %p3386_p7 = pnand %p3385_p3, %p4781_p10  ;;  %s3390_s3 = scalar_lea.vmem %s3389_s28, 8192 }
  0x51   : > { %2673 = vmatpush3.bf16.msra.mxu0 %v3186_v6  ;;  %v3195_v15 = vld [vmem:[#allocation5 + $0xa0] sm:$0xff]   ;;  %v3199_v19 = vld [vmem:[#allocation5 + $0x98] sm:$0xff]   ;;  %v3202_v22 = vld [vmem:[#allocation5 + $0x10] sm:$0xff]   ;;  %p3391_p11 = scmp.lt.s32.totalorder %s4594_s8, %s3389_s28  ;;  %p3392_p12 = scmp.lt.s32.totalorder %s3390_s3, %s3384_s27 }
  0x52   : > { %2785 = vmatpush3.bf16.msra.mxu1 %v3187_v7  ;;  %2674 = vmatprep.subr.bf16.mxu0 %v3188_v8  ;;  %v3203_v23 = vld [vmem:[#allocation5 + $0x90] sm:$0xff]   ;;  %v3204_v24 = vld [vmem:[#allocation5 + $0x48] sm:$0xff]   ;;  %v3208_v28 = vld [vmem:[#allocation5 + $0x40] sm:$0xff]   ;;  %p3387_p2 = pneg %p3386_p7 }
  0x53   : > { %2786 = vmatprep.subr.bf16.mxu1 %v3189_v9  ;;  %v3205_v25 = vld [vmem:[#allocation5 + $0xc8] sm:$0xff]   ;;  %v3209_v29 = vld [vmem:[#allocation5 + $0xc0] sm:$0xff]   ;;  %v3613_v33 = vld [vmem:[%s3599_s24 + $0x18] sm:$0xff]  ;;  %p3393_p13 = por %p3392_p12, %p3391_p11 }
  0x54   : > { %v3206_v26 = vld [vmem:[#allocation5 + $0x8] sm:$0xff]   ;;  %v3210_v30 = vld [vmem:[#allocation5] sm:$0xff]   ;;  %v1112_v36 = vunpack.c.l.s8.bf16 %v3613_v33  ;;  %v3622_v38 = vld [vmem:[%s3599_s24 + $0x10] sm:$0xff]  ;;  %v1120_v43 = vunpack.c.h.s8.bf16 %v3613_v33 }
  0x55   : > { %2675 = vmatpush3.bf16.msra.mxu0 %v3190_v10  ;;  %v3207_v27 = vld [vmem:[#allocation5 + $0x88] sm:$0xff]   ;;  %v3211_v31 = vld [vmem:[#allocation5 + $0x80] sm:$0xff]   ;;  %v1111_v40 = vunpack.c.l.s8.bf16 %v3622_v38  ;;  %v3212_v41 = vld [vmem:[#allocation5 + $0x178] sm:$0xff]   ;;  %v1119_v50 = vunpack.c.h.s8.bf16 %v3622_v38  ;;  %p3394_p0 = pnand %p3393_p13, %p3387_p2 }
  0x56   : > { %2787 = vmatpush3.bf16.msra.mxu1 %v3191_v11  ;;  %2676 = vmatprep.subr.bf16.mxu0 %v3192_v12  ;;  %v3610_v32 = vld [vmem:[%s3599_s24 + $0x8] sm:$0xff]  ;;  %v3616_v34 = vld [vmem:[%s3599_s24] sm:$0xff]  ;;  %v3213_v42 = vld [vmem:[#allocation5 + $0x138] sm:$0xff]  }
  0x57   : > { %2788 = vmatprep.subr.bf16.mxu1 %v3193_v13  ;;  %v1110_v35 = vunpack.c.l.s8.bf16 %v3610_v32  ;;  %v1109_v37 = vunpack.c.l.s8.bf16 %v3616_v34  ;;  %v1118_v39 = vunpack.c.h.s8.bf16 %v3610_v32  ;;  %1942 = vmatprep.mubr.bf16.mxu1 %v1112_v36  ;;  %v3214_v44 = vld [vmem:[#allocation5 + $0x1f8] sm:$0xff]   ;;  %v3628_v46 = vld [vmem:[%s3599_s24 + $0x48] sm:$0xff]  ;;  %v3216_v48 = vld [vmem:[#allocation5 + $0x170] sm:$0xff]   ;;  %v1117_v49 = vunpack.c.h.s8.bf16 %v3616_v34 }
  0x58   : > { %v3215_v45 = vld [vmem:[#allocation5 + $0x1b8] sm:$0xff]   ;;  %v3217_v51 = vld [vmem:[#allocation5 + $0x130] sm:$0xff]   ;;  %v1126_v52 = vunpack.c.l.s8.bf16 %v3628_v46  ;;  %v3638_v56 = vld [vmem:[%s3599_s24 + $0x40] sm:$0xff]  ;;  %v1134_v0 = vunpack.c.h.s8.bf16 %v3628_v46 }
  0x59   : > { %2677 = vmatpush3.bf16.msra.mxu0 %v3194_v14  ;;  %1781 = vmatprep.mubr.bf16.mxu0 %v1110_v35  ;;  %v3631_v47 = vld [vmem:[%s3599_s24 + $0x58] sm:$0xff]  ;;  %v3218_v54 = vld [vmem:[#allocation5 + $0x1f0] sm:$0xff]   ;;  %v3220_v58 = vld [vmem:[#allocation5 + $0x168] sm:$0xff]   ;;  %v1125_v62 = vunpack.c.l.s8.bf16 %v3638_v56  ;;  %v1133_v9 = vunpack.c.h.s8.bf16 %v3638_v56 }
  0x5a   : > { %2789 = vmatpush3.bf16.msra.mxu1 %v3195_v15  ;;  %2678 = vmatprep.subr.bf16.mxu0 %v3196_v16  ;;  %v1128_v53 = vunpack.c.l.s8.bf16 %v3631_v47  ;;  %v3219_v55 = vld [vmem:[#allocation5 + $0x1b0] sm:$0xff]   ;;  %v3221_v59 = vld [vmem:[#allocation5 + $0x128] sm:$0xff]   ;;  %v1136_v1 = vunpack.c.h.s8.bf16 %v3631_v47  ;;  %v3224_v2 = vld [vmem:[#allocation5 + $0x160] sm:$0xff]  }
  0x5b   : > { %2790 = vmatprep.subr.bf16.mxu1 %v3197_v17  ;;  %v3641_v57 = vld [vmem:[%s3599_s24 + $0x50] sm:$0xff]  ;;  %v3222_v60 = vld [vmem:[#allocation5 + $0x1e8] sm:$0xff]   ;;  %v3225_v3 = vld [vmem:[#allocation5 + $0x120] sm:$0xff]  }
  0x5c   : > { %v3223_v61 = vld [vmem:[#allocation5 + $0x1a8] sm:$0xff]   ;;  %v1127_v63 = vunpack.c.l.s8.bf16 %v3641_v57  ;;  %v3226_v4 = vld [vmem:[#allocation5 + $0x1e0] sm:$0xff]   ;;  %v3651_v7 = vld [vmem:[%s3599_s24 + $0x98] sm:$0xff]  ;;  %v1135_v10 = vunpack.c.h.s8.bf16 %v3641_v57 }
  0x5d   : > { %2679 = vmatpush3.bf16.msra.mxu0 %v3198_v18  ;;  %v3227_v5 = vld [vmem:[#allocation5 + $0x1a0] sm:$0xff]   ;;  %v3648_v6 = vld [vmem:[%s3599_s24 + $0x88] sm:$0xff]  ;;  %v3228_v8 = vld [vmem:[#allocation5 + $0x158] sm:$0xff]   ;;  %v1144_v15 = vunpack.c.l.s8.bf16 %v3651_v7 }
  0x5e   : > { %2791 = vmatpush3.bf16.msra.mxu1 %v3199_v19  ;;  %2680 = vmatprep.subr.bf16.mxu0 %v3200_v20  ;;  %v3656_v11 = vld [vmem:[%s3599_s24 + $0x80] sm:$0xff]  ;;  %v3659_v12 = vld [vmem:[%s3599_s24 + $0x90] sm:$0xff]  ;;  %v3229_v13 = vld [vmem:[#allocation5 + $0x118] sm:$0xff]   ;;  %v1142_v14 = vunpack.c.l.s8.bf16 %v3648_v6 }
  0x5f   : > { %2792 = vmatprep.subr.bf16.mxu1 %v3201_v21  ;;  %v3664_v16 = vld [vmem:[%s3599_s24 + $0xc8] sm:$0xff]  ;;  %v3667_v17 = vld [vmem:[%s3599_s24 + $0xd8] sm:$0xff]  ;;  %v3670_v19 = vld [vmem:[%s3599_s24 + $0xc0] sm:$0xff]  ;;  %v1149_v36 = vunpack.c.h.s8.bf16 %v3656_v11 }
  0x60   : > { %v3230_v18 = vld [vmem:[#allocation5 + $0x1d8] sm:$0xff]   ;;  %v3673_v21 = vld [vmem:[%s3599_s24 + $0xd0] sm:$0xff] }
  0x61   : > { %2681 = vmatpush3.bf16.msra.mxu0 %v3202_v22  ;;  %v3231_v20 = vld [vmem:[#allocation5 + $0x198] sm:$0xff]   ;;  %4672 = vst [vmem:[#allocation11_spill] sm:$0xff] %v3673_v21  ;;  %v3676_v22 = vld [vmem:[%s3599_s24 + $0x108] sm:$0xff]  ;;  %v3233_v35 = vld [vmem:[#allocation5 + $0x110] sm:$0xff]  }
  0x62   : > { %2793 = vmatpush3.bf16.msra.mxu1 %v3203_v23  ;;  %2682 = vmatprep.subr.bf16.mxu0 %v3204_v24  ;;  %v3679_v23 = vld [vmem:[%s3599_s24 + $0x118] sm:$0xff]  ;;  %v3682_v24 = vld [vmem:[%s3599_s24 + $0x100] sm:$0xff] }
  0x63   : > { %2794 = vmatprep.subr.bf16.mxu1 %v3205_v25  ;;  %v3685_v25 = vld [vmem:[%s3599_s24 + $0x110] sm:$0xff] }
  0x65   : > { %2683 = vmatpush3.bf16.msra.mxu0 %v3206_v26  ;;  %v3232_v26 = vld [vmem:[#allocation5 + $0x150] sm:$0xff]  }
  0x66   : > { %2795 = vmatpush3.bf16.msra.mxu1 %v3207_v27  ;;  %2684 = vmatprep.subr.bf16.mxu0 %v3208_v28  ;;  %v1141_v27 = vunpack.c.l.s8.bf16 %v3656_v11  ;;  %v1143_v28 = vunpack.c.l.s8.bf16 %v3659_v12 }
  0x67   : > { %2796 = vmatprep.subr.bf16.mxu1 %v3209_v29  ;;  %v1150_v29 = vunpack.c.h.s8.bf16 %v3648_v6 }
  0x69   : > { %2685 = vmatpush3.bf16.msra.mxu0 %v3210_v30  ;;  %v1152_v30 = vunpack.c.h.s8.bf16 %v3651_v7 }
  0x6a   : > { %2797 = vmatpush3.bf16.msra.mxu1 %v3211_v31  ;;  %2894 = vmatprep.subr.bf16.mxu0 %v3212_v41  ;;  %v3692_v31 = vld [vmem:[%s3599_s24 + $0x148] sm:$0xff]  ;;  %v3699_v41 = vld [vmem:[%s3599_s24 + $0x158] sm:$0xff] }
  0x6b   : > { %3006 = vmatprep.subr.bf16.mxu1 %v3214_v44  ;;  %v1159_v44 = vunpack.c.l.s8.bf16 %v3673_v21 }
  0x6c   : > { %1782 = vmatmul.mubr.bf16.vlgmr.msra.gmra.mxu0 %v1109_v37  ;;  %v1151_v37 = vunpack.c.h.s8.bf16 %v3659_v12 }
  0x6d   : > { %1943 = vmatmul.mubr.bf16.vlgmr.msra.gmra.mxu1 %v1111_v40  ;;  %1789 = vmatprep.mubr.bf16.mxu0 %v1118_v39  ;;  %v1158_v39 = vunpack.c.l.s8.bf16 %v3664_v16  ;;  %v1160_v40 = vunpack.c.l.s8.bf16 %v3667_v17 }
  0x6e   : > { %2895 = vmatpush3.bf16.msra.mxu0 %v3213_v42  ;;  %3007 = vmatpush3.bf16.msra.mxu1 %v3215_v45  ;;  %v3234_v42 = vld [vmem:[#allocation5 + $0x1d0] sm:$0xff]  }
  0x6f   : > { %1950 = vmatprep.mubr.bf16.mxu1 %v1120_v43  ;;  %2896 = vmatprep.subr.bf16.mxu0 %v3216_v48  ;;  %v1157_v43 = vunpack.c.l.s8.bf16 %v3670_v19  ;;  %v3845_v48 = vld [vmem:[%s3599_s24 + $0xe8] sm:$0xff] }
  0x70   : > { %3008 = vmatprep.subr.bf16.mxu1 %v3218_v54  ;;  %v3710_v54 = vld [vmem:[%s3599_s24 + $0x140] sm:$0xff] }
  0x72   : > { %2897 = vmatpush3.bf16.msra.mxu0 %v3217_v51  ;;  %3009 = vmatpush3.bf16.msra.mxu1 %v3219_v55  ;;  %v3713_v55 = vld [vmem:[%s3599_s24 + $0x150] sm:$0xff]  ;;  %v4682_v51 = vunpack.c.h.s8.bf16 %v3667_v17 }
  0x73   : > { %2898 = vmatprep.subr.bf16.mxu0 %v3220_v58  ;;  %3010 = vmatprep.subr.bf16.mxu1 %v3222_v60  ;;  %v3716_v58 = vld [vmem:[%s3599_s24 + $0x188] sm:$0xff] }
  0x74   : > { %1790 = vmatmul.mubr.bf16.gmra.mxu0 %v1117_v49  ;;  %v3235_v49 = vld [vmem:[#allocation5 + $0x190] sm:$0xff]  }
  0x75   : > { %1951 = vmatmul.mubr.bf16.gmra.mxu1 %v1119_v50  ;;  %1797 = vmatprep.mubr.bf16.mxu0 %v1126_v52 }
  0x76   : > { %1958 = vmatprep.mubr.bf16.mxu1 %v1128_v53  ;;  %2899 = vmatpush3.bf16.msra.mxu0 %v3221_v59  ;;  %v3808_v59 = vld [vmem:[%s3599_s24 + $0x60] sm:$0xff]  ;;  %v3819_v53 = vld [vmem:[%s3599_s24 + $0xa8] sm:$0xff] }
  0x77   : > { %3011 = vmatpush3.bf16.msra.mxu1 %v3223_v61  ;;  %2900 = vmatprep.subr.bf16.mxu0 %v3224_v2 }
  0x78   : > { %3012 = vmatprep.subr.bf16.mxu1 %v3226_v4  ;;  %v3241_v4 = vld [vmem:[#allocation5 + $0x100] sm:$0xff]  }
  0x7a   : > { %2901 = vmatpush3.bf16.msra.mxu0 %v3225_v3  ;;  %v254_v3 = vunpack.c.1.s8 %v3610_v32 }
  0x7b   : > { %3013 = vmatpush3.bf16.msra.mxu1 %v3227_v5  ;;  %2902 = vmatprep.subr.bf16.mxu0 %v3228_v8  ;;  %v3236_v8 = vld [vmem:[#allocation5 + $0x148] sm:$0xff]   ;;  %v3759_v5 = vld [vmem:[%s3599_s24 + $0x1d0] sm:$0xff] }
  0x7c   : > { %1798 = vmatmul.mubr.bf16.gmra.mxu0 %v1125_v62  ;;  %3014 = vmatprep.subr.bf16.mxu1 %v3230_v18  ;;  %4678 = vst [vmem:[#allocation17_spill] sm:$0xff] %v3759_v5  ;;  %v3776_v62 = vld [vmem:[%s3599_s24 + $0x28] sm:$0xff]  ;;  %v510_v60 = vcvt.s32.f32 %v254_v3  ;;  %v4683_v5 = vunpack.c.1.s8 %v3613_v33 }
  0x7d   : > { %1959 = vmatmul.mubr.bf16.gmra.mxu1 %v1127_v63  ;;  %1805 = vmatprep.mubr.bf16.mxu0 %v1134_v0  ;;  %v3723_v63 = vld [vmem:[%s3599_s24 + $0x198] sm:$0xff]  ;;  %v3726_v0 = vld [vmem:[%s3599_s24 + $0x180] sm:$0xff]  ;;  %v250_v3 = vunpack.c.0.s8 %v3776_v62 }
  0x7e   : > { %1966 = vmatprep.mubr.bf16.mxu1 %v1136_v1  ;;  %2903 = vmatpush3.bf16.msra.mxu0 %v3229_v13  ;;  %4673 = vst [vmem:[#allocation12_spill] sm:$0xff] %v3726_v0  ;;  %v3729_v1 = vld [vmem:[%s3599_s24 + $0x190] sm:$0xff]  ;;  %v3237_v13 = vld [vmem:[#allocation5 + $0x108] sm:$0xff]   ;;  %v4685_v0 = vunpack.c.2.s8 %v3610_v32 }
  0x7f   : > { %3015 = vmatpush3.bf16.msra.mxu1 %v3231_v20  ;;  %2904 = vmatprep.subr.bf16.mxu0 %v3232_v26  ;;  %4674 = vst [vmem:[#allocation13_spill] sm:$0xff] %v3729_v1  ;;  %v3240_v26 = vld [vmem:[#allocation5 + $0x140] sm:$0xff]  }
  0x80   : > { %3016 = vmatprep.subr.bf16.mxu1 %v3234_v42  ;;  %v247_v42 = vunpack.c.0.s8 %v3622_v38 }
  0x82   : > { %2905 = vmatpush3.bf16.msra.mxu0 %v3233_v35  ;;  %v3238_v35 = vld [vmem:[#allocation5 + $0x1c8] sm:$0xff]  }
  0x83   : > { %3017 = vmatpush3.bf16.msra.mxu1 %v3235_v49  ;;  %2906 = vmatprep.subr.bf16.mxu0 %v3236_v8  ;;  %v503_v8 = vcvt.s32.f32 %v247_v42  ;;  %v255_v49 = vunpack.c.1.s8 %v3622_v38  ;;  %v3786_v42 = vld [vmem:[%s3599_s24 + $0x30] sm:$0xff] }
  0x84   : > { %1806 = vmatmul.mubr.bf16.gmra.mxu0 %v1133_v9  ;;  %3018 = vmatprep.subr.bf16.mxu1 %v3238_v35  ;;  %v248_v9 = vunpack.c.0.s8 %v3613_v33  ;;  %v251_v52 = vunpack.c.0.s8 %v3786_v42  ;;  %v259_v17 = vunpack.c.1.s8 %v3786_v42 }
  0x85   : > { %1967 = vmatmul.mubr.bf16.gmra.mxu1 %v1135_v10  ;;  %1813 = vmatprep.mubr.bf16.mxu0 %v1142_v14  ;;  %v245_v14 = vunpack.c.0.s8 %v3616_v34  ;;  %v3239_v10 = vld [vmem:[#allocation5 + $0x188] sm:$0xff]  }
  0x86   : > { %1974 = vmatprep.mubr.bf16.mxu1 %v1144_v15  ;;  %v246_v15 = vunpack.c.0.s8 %v3610_v32  ;;  %2907 = vmatpush3.bf16.msra.mxu0 %v3237_v13  ;;  %v3783_v13 = vld [vmem:[%s3599_s24 + $0x20] sm:$0xff]  ;;  %v507_v61 = vcvt.s32.f32 %v251_v52  ;;  %v264_v52 = vunpack.c.2.s8 %v3613_v33 }
  0x87   : > { %v501_v18 = vcvt.s32.f32 %v245_v14  ;;  %3019 = vmatpush3.bf16.msra.mxu1 %v3239_v10  ;;  %2908 = vmatprep.subr.bf16.mxu0 %v3240_v26  ;;  %v3780_v14 = vld [vmem:[%s3599_s24 + $0x38] sm:$0xff]  ;;  %v249_v50 = vunpack.c.0.s8 %v3783_v13  ;;  %v257_v45 = vunpack.c.1.s8 %v3783_v13 }
  0x88   : > { %v502_v20 = vcvt.s32.f32 %v246_v15  ;;  %v3242_v15 = vld [vmem:[#allocation5 + $0x1c0] sm:$0xff]  }
  0x89   : > { %3020 = vmatprep.subr.bf16.mxu1 %v3242_v15  ;;  %v3798_v15 = vld [vmem:[%s3599_s24 + $0x78] sm:$0xff]  ;;  %v505_v2 = vcvt.s32.f32 %v249_v50 }
  0x8a   : > { %v757_v35 = vadd.f32 %v502_v20, %v501_v18  ;;  %v3243_v20 = vld [vmem:[#allocation5 + $0x180] sm:$0xff]   ;;  %2909 = vmatpush3.bf16.msra.mxu0 %v3241_v4  ;;  %v504_v18 = vcvt.s32.f32 %v248_v9  ;;  %v3795_v4 = vld [vmem:[%s3599_s24 + $0x68] sm:$0xff]  ;;  %v4681_v9 = vunpack.c.h.s8.bf16 %v3664_v16  ;;  %v512_v16 = vcvt.s32.f32 %v4683_v5 }
  0x8b   : > { %3021 = vmatpush3.bf16.msra.mxu1 %v3243_v20  ;;  %v265_v5 = vunpack.c.2.s8 %v3783_v13 }
  0x8c   : > { %1814 = vmatmul.mubr.bf16.gmra.mxu0 %v1141_v27  ;;  %v3746_v27 = vld [vmem:[%s3599_s24 + $0x1c8] sm:$0xff]  ;;  %v758_v26 = vadd.f32 %v757_v35, %v503_v8  ;;  %v511_v8 = vcvt.s32.f32 %v255_v49  ;;  %v3829_v35 = vld [vmem:[%s3599_s24 + $0xa0] sm:$0xff]  ;;  %v252_v49 = vunpack.c.0.s8 %v3780_v14 }
  0x8d   : > { %1975 = vmatmul.mubr.bf16.gmra.mxu1 %v1143_v28  ;;  %1821 = vmatprep.mubr.bf16.mxu0 %v1150_v29  ;;  %4675 = vst [vmem:[#allocation14_spill] sm:$0xff] %v3746_v27  ;;  %v3749_v28 = vld [vmem:[%s3599_s24 + $0x1d8] sm:$0xff]  ;;  %v253_v29 = vunpack.c.1.s8 %v3616_v34 }
  0x8e   : > { %1982 = vmatprep.mubr.bf16.mxu1 %v1152_v30  ;;  %4676 = vst [vmem:[#allocation15_spill] sm:$0xff] %v3749_v28  ;;  %v3756_v30 = vld [vmem:[%s3599_s24 + $0x1c0] sm:$0xff]  ;;  %v759_v20 = vadd.f32 %v758_v26, %v504_v18  ;;  %v263_v18 = vunpack.c.2.s8 %v3622_v38  ;;  %v3878_v28 = vld [vmem:[%s3599_s24 + $0xf0] sm:$0xff]  ;;  %v513_v26 = vcvt.s32.f32 %v257_v45  ;;  %v515_v45 = vcvt.s32.f32 %v259_v17 }
  0x8f   : > { %4677 = vst [vmem:[#allocation16_spill] sm:$0xff] %v3756_v30  ;;  %v509_v10 = vcvt.s32.f32 %v253_v29  ;;  %v3811_v29 = vld [vmem:[%s3599_s24 + $0x70] sm:$0xff]  ;;  %v508_v30 = vcvt.s32.f32 %v252_v49  ;;  %v269_v17 = vunpack.c.3.s8 %v3616_v34 }
  0x90   : > { %v760_v50 = vadd.f32 %v759_v20, %v505_v2  ;;  %v4686_v2 = vunpack.c.h.s8.bf16 %v3670_v19 }
  0x94   : > { %1822 = vmatmul.mubr.bf16.gmra.mxu0 %v1149_v36  ;;  %v3848_v36 = vld [vmem:[%s3599_s24 + $0xf8] sm:$0xff] }
  0x95   : > { %1983 = vmatmul.mubr.bf16.gmra.mxu1 %v1151_v37  ;;  %1829 = vmatprep.mubr.bf16.mxu0 %v1158_v39  ;;  %v3822_v37 = vld [vmem:[%s3599_s24 + $0xb8] sm:$0xff]  ;;  %v3832_v39 = vld [vmem:[%s3599_s24 + $0xb0] sm:$0xff] }
  0x96   : > { %1990 = vmatprep.mubr.bf16.mxu1 %v1160_v40  ;;  %4679 = vst [vmem:[#allocation18_spill] sm:$0xff] %v3822_v37  ;;  %4680 = vst [vmem:[#allocation19_spill] sm:$0xff] %v3832_v39  ;;  %v506_v40 = vcvt.s32.f32 %v250_v3  ;;  %v3870_v3 = vld [vmem:[%s3599_s24 + $0xe0] sm:$0xff]  ;;  %v518_v37 = vcvt.s32.f32 %v4685_v0  ;;  %v4689_v0 = vunpack.c.l.s8.bf16 %v3679_v23 }
  0x9c   : > { %1830 = vmatmul.mubr.bf16.gmra.mxu0 %v1157_v43  ;;  %v761_v43 = vadd.f32 %v760_v50, %v506_v40  ;;  %v519_v40 = vcvt.s32.f32 %v263_v18  ;;  %v267_v18 = vunpack.c.2.s8 %v3786_v42 }
  0x9d   : > { %1991 = vmatmul.mubr.bf16.gmra.mxu1 %v1159_v44  ;;  %1837 = vmatprep.mubr.bf16.mxu0 %v4681_v9  ;;  %v258_v44 = vunpack.c.1.s8 %v3776_v62  ;;  %v766_v9 = vadd.f32 %v510_v60, %v509_v10  ;;  %v4684_v60 = vunpack.c.2.s8 %v3616_v34 }
  0x9e   : > { %1998 = vmatprep.mubr.bf16.mxu1 %v4682_v51  ;;  %v260_v51 = vunpack.c.1.s8 %v3780_v14  ;;  %v762_v49 = vadd.f32 %v761_v43, %v507_v61  ;;  %v520_v61 = vcvt.s32.f32 %v264_v52  ;;  %v4688_v43 = vunpack.c.l.s8.bf16 %v3676_v22 }
  0x9f   : > { %v767_v27 = vadd.f32 %v766_v9, %v511_v8  ;;  %v514_v20 = vcvt.s32.f32 %v258_v44  ;;  %v517_v10 = vcvt.s32.f32 %v4684_v60  ;;  %v266_v9 = vunpack.c.2.s8 %v3776_v62 }
  0xa0   : > { %v516_v8 = vcvt.s32.f32 %v260_v51  ;;  %v4687_v44 = vunpack.c.h.s8.bf16 %v3673_v21  ;;  %v763_v39 = vadd.f32 %v762_v49, %v508_v30  ;;  %v270_v51 = vunpack.c.3.s8 %v3610_v32 }
  0xa1   : > { %v768_v1 = vadd.f32 %v767_v27, %v512_v16  ;;  %v775_v27 = vadd.f32 %v518_v37, %v517_v10  ;;  %v268_v16 = vunpack.c.2.s8 %v3780_v14  ;;  %v521_v30 = vcvt.s32.f32 %v265_v5 }
  0xa2   : > { %764 = vadd.xlane.f32.xlu0 %v763_v39  ;;  %v271_v37 = vunpack.c.3.s8 %v3622_v38  ;;  %v1172_v52 = vunpack.c.h.s8.bf16 %v3848_v36  ;;  %v522_v10 = vcvt.s32.f32 %v266_v9  ;;  %v272_v49 = vunpack.c.3.s8 %v3613_v33 }
  0xa3   : > { %v769_v60 = vadd.f32 %v768_v1, %v513_v26  ;;  %v776_v1 = vadd.f32 %v775_v27, %v519_v40  ;;  %v1170_v26 = vunpack.c.h.s8.bf16 %v3845_v48  ;;  %v526_v50 = vcvt.s32.f32 %v270_v51 }
  0xa4   : > { %1838 = vmatmul.mubr.bf16.gmra.mxu0 %v4686_v2  ;;  %v523_v34 = vcvt.s32.f32 %v267_v18  ;;  %v524_v21 = vcvt.s32.f32 %v268_v16  ;;  %v273_v32 = vunpack.c.3.s8 %v3783_v13  ;;  %v527_v39 = vcvt.s32.f32 %v271_v37  ;;  %v3923_v37 = vld [vmem:[%s3599_s24 + $0x128] sm:$0xff] }
  0xa5   : > { %1999 = vmatmul.mubr.bf16.gmra.mxu1 %v4687_v44  ;;  %1845 = vmatprep.mubr.bf16.mxu0 %v4688_v43  ;;  %v770_v2 = vadd.f32 %v769_v60, %v514_v20  ;;  %v777_v43 = vadd.f32 %v776_v1, %v520_v61  ;;  %v1169_v38 = vunpack.c.h.s8.bf16 %v3870_v3  ;;  %v274_v40 = vunpack.c.3.s8 %v3776_v62 }
  0xa6   : > { %2006 = vmatprep.mubr.bf16.mxu1 %v4689_v0  ;;  %v525_v0 = vcvt.s32.f32 %v269_v17  ;;  %v275_v9 = vunpack.c.3.s8 %v3786_v42  ;;  %v528_v60 = vcvt.s32.f32 %v272_v49  ;;  %v4690_v61 = vunpack.c.l.s8.bf16 %v3682_v24 }
  0xa7   : > { %v771_v44 = vadd.f32 %v770_v2, %v515_v45  ;;  %v778_v5 = vadd.f32 %v777_v43, %v521_v30  ;;  %v277_v45 = vunpack.c.0.s8 %v3638_v56  ;;  %v4691_v27 = vunpack.c.l.s8.bf16 %v3685_v25 }
  0xa8   : > { %v784_v33 = vadd.f32 %v526_v50, %v525_v0  ;;  %v278_v16 = vunpack.c.0.s8 %v3628_v46  ;;  %v279_v17 = vunpack.c.0.s8 %v3641_v57  ;;  %v4692_v51 = vunpack.c.h.s8.bf16 %v3676_v22 }
  0xa9   : > { %v772_v20 = vadd.f32 %v771_v44, %v516_v8  ;;  %v779_v18 = vadd.f32 %v778_v5, %v522_v10  ;;  %v276_v8 = vunpack.c.3.s8 %v3780_v14  ;;  %v4693_v50 = vunpack.c.h.s8.bf16 %v3679_v23 }
  0xaa   : > { %v529_v30 = vcvt.s32.f32 %v273_v32  ;;  %v785_v1 = vadd.f32 %v784_v33, %v527_v39  ;;  %v280_v10 = vunpack.c.0.s8 %v3631_v47  ;;  %v530_v44 = vcvt.s32.f32 %v274_v40 }
  0xab   : > { %773 = vadd.xlane.f32.xlu0 %v772_v20  ;;  %v780_v49 = vadd.f32 %v779_v18, %v523_v34  ;;  %v533_v43 = vcvt.s32.f32 %v277_v45  ;;  %v534_v0 = vcvt.s32.f32 %v278_v16  ;;  %v531_v5 = vcvt.s32.f32 %v275_v9 }
  0xac   : > { %1846 = vmatmul.mubr.bf16.gmra.mxu0 %v4690_v61  ;;  %v786_v22 = vadd.f32 %v785_v1, %v528_v60  ;;  %v281_v61 = vunpack.c.0.s8 %v3808_v59  ;;  %v535_v23 = vcvt.s32.f32 %v279_v17  ;;  %v282_v39 = vunpack.c.0.s8 %v3795_v4 }
  0xad   : > { %2007 = vmatmul.mubr.bf16.gmra.mxu1 %v4691_v27  ;;  %1853 = vmatprep.mubr.bf16.mxu0 %v4692_v51  ;;  %v781_v27 = vadd.f32 %v780_v49, %v524_v21  ;;  %v532_v51 = vcvt.s32.f32 %v276_v8  ;;  %v283_v20 = vunpack.c.0.s8 %v3811_v29  ;;  %v536_v34 = vcvt.s32.f32 %v280_v10 }
  0xae   : > { %2014 = vmatprep.mubr.bf16.mxu1 %v4693_v50  ;;  %v787_v33 = vadd.f32 %v786_v22, %v529_v30  ;;  %v3930_v50 = vld [vmem:[%s3599_s24 + $0x138] sm:$0xff]  ;;  %v793_v40 = vadd.f32 %v534_v0, %v533_v43  ;;  %v284_v9 = vunpack.c.0.s8 %v3798_v15  ;;  %v285_v60 = vunpack.c.1.s8 %v3638_v56 }
  0xaf   : > { %782 = vadd.xlane.f32.xlu1 %v781_v27  ;;  %v286_v45 = vunpack.c.1.s8 %v3628_v46  ;;  %v287_v21 = vunpack.c.1.s8 %v3641_v57  ;;  %v537_v8 = vcvt.s32.f32 %v281_v61  ;;  %v288_v17 = vunpack.c.1.s8 %v3631_v47 }
  0xb0   : > { %v788_v18 = vadd.f32 %v787_v33, %v530_v44  ;;  %v794_v16 = vadd.f32 %v793_v40, %v535_v23  ;;  %v4694_v30 = vunpack.c.h.s8.bf16 %v3682_v24  ;;  %v4695_v1 = vunpack.c.h.s8.bf16 %v3685_v25 }
  0xb1   : > { %v538_v49 = vcvt.s32.f32 %v282_v39  ;;  %v541_v43 = vcvt.s32.f32 %v285_v60  ;;  %v542_v0 = vcvt.s32.f32 %v286_v45  ;;  %v4696_v22 = vunpack.c.l.s8.bf16 %v3692_v31 }
  0xb2   : > { %v4697_v44 = vunpack.c.l.s8.bf16 %v3699_v41  ;;  %v789_v61 = vadd.f32 %v788_v18, %v531_v5  ;;  %v795_v23 = vadd.f32 %v794_v16, %v536_v34  ;;  %v289_v24 = vunpack.c.1.s8 %v3808_v59 }
  0xb3   : > { %v543_v27 = vcvt.s32.f32 %v287_v21  ;;  %v539_v25 = vcvt.s32.f32 %v283_v20  ;;  %v540_v33 = vcvt.s32.f32 %v284_v9  ;;  %v290_v40 = vunpack.c.1.s8 %v3795_v4  ;;  %v3958_v9 = vld [vmem:[%s3599_s24 + $0x130] sm:$0xff] }
  0xb4   : > { %1854 = vmatmul.mubr.bf16.gmra.mxu0 %v4694_v30  ;;  %v291_v39 = vunpack.c.1.s8 %v3811_v29  ;;  %v790_v60 = vadd.f32 %v789_v61, %v532_v51  ;;  %v796_v45 = vadd.f32 %v795_v23, %v537_v8  ;;  %v3951_v30 = vld [vmem:[%s3599_s24 + $0x120] sm:$0xff]  ;;  %v293_v5 = vunpack.c.2.s8 %v3638_v56 }
  0xb5   : > { %2015 = vmatmul.mubr.bf16.gmra.mxu1 %v4695_v1  ;;  %1861 = vmatprep.mubr.bf16.mxu0 %v4696_v22  ;;  %v544_v1 = vcvt.s32.f32 %v288_v17  ;;  %v802_v22 = vadd.f32 %v542_v0, %v541_v43  ;;  %v294_v34 = vunpack.c.2.s8 %v3628_v46  ;;  %v295_v21 = vunpack.c.2.s8 %v3641_v57 }
  0xb6   : > { %2022 = vmatprep.mubr.bf16.mxu1 %v4697_v44  ;;  %v292_v44 = vunpack.c.1.s8 %v3798_v15  ;;  %791 = vadd.xlane.f32.xlu1 %v790_v60  ;;  %v797_v20 = vadd.f32 %v796_v45, %v538_v49  ;;  %v545_v18 = vcvt.s32.f32 %v289_v24  ;;  %v296_v51 = vunpack.c.2.s8 %v3631_v47 }
  0xb7   : > { %v803_v16 = vadd.f32 %v802_v22, %v543_v27  ;;  %v1177_v8 = vunpack.c.l.s8.bf16 %v3951_v30  ;;  %v546_v17 = vcvt.s32.f32 %v290_v40  ;;  %v297_v43 = vunpack.c.2.s8 %v3808_v59 }
  0xb8   : > { %v549_v0 = vcvt.s32.f32 %v293_v5  ;;  %v798_v61 = vadd.f32 %v797_v20, %v539_v25  ;;  %v550_v10 = vcvt.s32.f32 %v294_v34  ;;  %v551_v32 = vcvt.s32.f32 %v295_v21 }
  0xb9   : > { %v804_v23 = vadd.f32 %v803_v16, %v544_v1  ;;  %v4698_v2 = vunpack.c.l.s8.bf16 %v3710_v54  ;;  %v4699_v49 = vunpack.c.l.s8.bf16 %v3713_v55  ;;  %v547_v27 = vcvt.s32.f32 %v291_v39 }
  0xba   : > { %v548_v60 = vcvt.s32.f32 %v292_v44  ;;  %v298_v45 = vunpack.c.2.s8 %v3795_v4  ;;  %v4700_v40 = vunpack.c.h.s8.bf16 %v3692_v31  ;;  %v4701_v25 = vunpack.c.h.s8.bf16 %v3699_v41 }
  0xbb   : > { %v799_v1 = vadd.f32 %v798_v61, %v540_v33  ;;  %v805_v22 = vadd.f32 %v804_v23, %v545_v18  ;;  %v552_v5 = vcvt.s32.f32 %v296_v51  ;;  %v811_v34 = vadd.f32 %v550_v10, %v549_v0 }
  0xbc   : > { %1862 = vmatmul.mubr.bf16.gmra.mxu0 %v4698_v2  ;;  %v299_v2 = vunpack.c.2.s8 %v3811_v29  ;;  %v300_v21 = vunpack.c.2.s8 %v3798_v15  ;;  %v301_v20 = vunpack.c.3.s8 %v3638_v56  ;;  %v302_v39 = vunpack.c.3.s8 %v3628_v46 }
  0xbd   : > { %2023 = vmatmul.mubr.bf16.gmra.mxu1 %v4699_v49  ;;  %1869 = vmatprep.mubr.bf16.mxu0 %v4700_v40  ;;  %v806_v44 = vadd.f32 %v805_v22, %v546_v17  ;;  %v553_v16 = vcvt.s32.f32 %v297_v43  ;;  %v812_v31 = vadd.f32 %v811_v34, %v551_v32  ;;  %v303_v49 = vunpack.c.3.s8 %v3641_v57 }
  0xbe   : > { %2030 = vmatprep.mubr.bf16.mxu1 %v4701_v25  ;;  %800 = vadd.xlane.f32.xlu0 %v799_v1  ;;  %v554_v18 = vcvt.s32.f32 %v298_v45  ;;  %v304_v10 = vunpack.c.3.s8 %v3631_v47  ;;  %v557_v61 = vcvt.s32.f32 %v301_v20  ;;  %v558_v23 = vcvt.s32.f32 %v302_v39 }
  0xbf   : > { %v807_v51 = vadd.f32 %v806_v44, %v547_v27  ;;  %v813_v0 = vadd.f32 %v812_v31, %v552_v5  ;;  %v555_v56 = vcvt.s32.f32 %v299_v2  ;;  %v556_v40 = vcvt.s32.f32 %v300_v21 }
  0xc0   : > { %v305_v46 = vunpack.c.3.s8 %v3808_v59  ;;  %v559_v17 = vcvt.s32.f32 %v303_v49  ;;  %v306_v25 = vunpack.c.3.s8 %v3795_v4  ;;  %v4702_v1 = vunpack.c.h.s8.bf16 %v3710_v54 }
  0xc1   : > { %v808_v43 = vadd.f32 %v807_v51, %v548_v60  ;;  %v814_v32 = vadd.f32 %v813_v0, %v553_v16  ;;  %v4703_v47 = vunpack.c.h.s8.bf16 %v3713_v55  ;;  %v307_v27 = vunpack.c.3.s8 %v3811_v29  ;;  %v3999_v16 = vld [vmem:[%s3599_s24 + $0x168] sm:$0xff] }
  0xc2   : > { %v560_v45 = vcvt.s32.f32 %v304_v10  ;;  %v820_v22 = vadd.f32 %v558_v23, %v557_v61  ;;  %v309_v5 = vunpack.c.0.s8 %v3656_v11  ;;  %v4704_v60 = vunpack.c.l.s8.bf16 %v3716_v58 }
  0xc3   : > { %v4705_v34 = vunpack.c.l.s8.bf16 %v3723_v63  ;;  %v815_v2 = vadd.f32 %v814_v32, %v554_v18  ;;  %v308_v54 = vunpack.c.3.s8 %v3798_v15  ;;  %v310_v21 = vunpack.c.0.s8 %v3648_v6  ;;  %809 = vadd.xlane.f32.xlu1 %v808_v43 }
  0xc4   : > { %1870 = vmatmul.mubr.bf16.gmra.mxu0 %v4702_v1  ;;  %v311_v55 = vunpack.c.0.s8 %v3659_v12  ;;  %v561_v39 = vcvt.s32.f32 %v305_v46  ;;  %v821_v44 = vadd.f32 %v820_v22, %v559_v17  ;;  %v312_v31 = vunpack.c.0.s8 %v3651_v7  ;;  %v4006_v22 = vld [vmem:[%s3599_s24 + $0x178] sm:$0xff] }
  0xc5   : > { %2031 = vmatmul.mubr.bf16.gmra.mxu1 %v4703_v47  ;;  %1877 = vmatprep.mubr.bf16.mxu0 %v4704_v60  ;;  %v816_v49 = vadd.f32 %v815_v2, %v555_v56  ;;  %v562_v10 = vcvt.s32.f32 %v306_v25  ;;  %v565_v51 = vcvt.s32.f32 %v309_v5  ;;  %v566_v18 = vcvt.s32.f32 %v310_v21  ;;  %v4706_v60 = vld [vmem:[#allocation19_spill] sm:$0xff]  ;;  %v4707_v5 = vld [vmem:[#allocation18_spill] sm:$0xff] }
  0xc6   : > { %2038 = vmatprep.mubr.bf16.mxu1 %v4705_v34  ;;  %v563_v0 = vcvt.s32.f32 %v307_v27  ;;  %v822_v61 = vadd.f32 %v821_v44, %v560_v45  ;;  %v313_v23 = vunpack.c.0.s8 %v3829_v35  ;;  %v567_v32 = vcvt.s32.f32 %v311_v55  ;;  %v4710_v55 = vld [vmem:[#allocation13_spill] sm:$0xff] }
  0xc7   : > { %v817_v1 = vadd.f32 %v816_v49, %v556_v40  ;;  %v564_v43 = vcvt.s32.f32 %v308_v54  ;;  %v314_v46 = vunpack.c.0.s8 %v3819_v53  ;;  %v315_v34 = vunpack.c.0.s8 %v4706_v60  ;;  %v4708_v54 = vld [vmem:[#allocation12_spill] sm:$0xff] }
  0xc8   : > { %v823_v17 = vadd.f32 %v822_v61, %v561_v39  ;;  %v568_v56 = vcvt.s32.f32 %v312_v31  ;;  %v829_v25 = vadd.f32 %v566_v18, %v565_v51  ;;  %v316_v27 = vunpack.c.0.s8 %v4707_v5 }
  0xc9   : > { %818 = vadd.xlane.f32.xlu0 %v817_v1  ;;  %v317_v45 = vunpack.c.1.s8 %v3656_v11  ;;  %v318_v2 = vunpack.c.1.s8 %v3648_v6  ;;  %v319_v40 = vunpack.c.1.s8 %v3659_v12  ;;  %v4709_v21 = vunpack.c.l.s8.bf16 %v4708_v54 }
  0xca   : > { %v4711_v39 = vunpack.c.l.s8.bf16 %v4710_v55  ;;  %v824_v44 = vadd.f32 %v823_v17, %v562_v10  ;;  %v569_v49 = vcvt.s32.f32 %v313_v23  ;;  %v830_v61 = vadd.f32 %v829_v25, %v567_v32 }
  0xcb   : > { %v320_v31 = vunpack.c.1.s8 %v3651_v7  ;;  %v4712_v51 = vunpack.c.h.s8.bf16 %v3716_v58  ;;  %v4713_v18 = vunpack.c.h.s8.bf16 %v3723_v63  ;;  %v570_v47 = vcvt.s32.f32 %v314_v46 }
  0xcc   : > { %1878 = vmatmul.mubr.bf16.gmra.mxu0 %v4709_v21  ;;  %v573_v20 = vcvt.s32.f32 %v317_v45  ;;  %v574_v21 = vcvt.s32.f32 %v318_v2  ;;  %v825_v57 = vadd.f32 %v824_v44, %v563_v0  ;;  %v831_v33 = vadd.f32 %v830_v61, %v568_v56 }
  0xcd   : > { %2039 = vmatmul.mubr.bf16.gmra.mxu1 %v4711_v39  ;;  %1885 = vmatprep.mubr.bf16.mxu0 %v4712_v51  ;;  %v321_v10 = vunpack.c.1.s8 %v3829_v35  ;;  %v575_v23 = vcvt.s32.f32 %v319_v40  ;;  %v571_v32 = vcvt.s32.f32 %v315_v34  ;;  %v572_v17 = vcvt.s32.f32 %v316_v27  ;;  %v4027_v51 = vld [vmem:[%s3599_s24 + $0x160] sm:$0xff]  ;;  %v4034_v27 = vld [vmem:[%s3599_s24 + $0x170] sm:$0xff] }
  0xce   : > { %2046 = vmatprep.mubr.bf16.mxu1 %v4713_v18  ;;  %v322_v58 = vunpack.c.1.s8 %v3819_v53  ;;  %v323_v25 = vunpack.c.1.s8 %v4706_v60  ;;  %v826_v63 = vadd.f32 %v825_v57, %v564_v43  ;;  %v832_v39 = vadd.f32 %v831_v33, %v569_v49 }
  0xcf   : > { %v576_v18 = vcvt.s32.f32 %v320_v31  ;;  %v838_v46 = vadd.f32 %v574_v21, %v573_v20  ;;  %v324_v45 = vunpack.c.1.s8 %v4707_v5  ;;  %v325_v0 = vunpack.c.2.s8 %v3656_v11 }
  0xd0   : > { %v326_v56 = vunpack.c.2.s8 %v3648_v6  ;;  %v327_v2 = vunpack.c.2.s8 %v3659_v12  ;;  %827 = vadd.xlane.f32.xlu1 %v826_v63  ;;  %v833_v34 = vadd.f32 %v832_v39, %v570_v47  ;;  %v577_v40 = vcvt.s32.f32 %v321_v10  ;;  %v4716_v10 = vld [vmem:[#allocation14_spill] sm:$0xff] }
  0xd1   : > { %v839_v44 = vadd.f32 %v838_v46, %v575_v23  ;;  %v328_v33 = vunpack.c.2.s8 %v3651_v7  ;;  %v578_v43 = vcvt.s32.f32 %v322_v58  ;;  %v329_v20 = vunpack.c.2.s8 %v3829_v35  ;;  %v4718_v46 = vld [vmem:[#allocation15_spill] sm:$0xff] }
  0xd2   : > { %v581_v49 = vcvt.s32.f32 %v325_v0  ;;  %v4714_v61 = vunpack.c.h.s8.bf16 %v4708_v54  ;;  %v4715_v31 = vunpack.c.h.s8.bf16 %v4710_v55  ;;  %v834_v21 = vadd.f32 %v833_v34, %v571_v32 }
  0xd3   : > { %v840_v47 = vadd.f32 %v839_v44, %v576_v18  ;;  %v582_v63 = vcvt.s32.f32 %v326_v56  ;;  %v583_v39 = vcvt.s32.f32 %v327_v2  ;;  %v4717_v23 = vunpack.c.l.s8.bf16 %v4716_v10 }
  0xd4   : > { %1886 = vmatmul.mubr.bf16.gmra.mxu0 %v4714_v61  ;;  %v4719_v1 = vunpack.c.l.s8.bf16 %v4718_v46  ;;  %v579_v57 = vcvt.s32.f32 %v323_v25  ;;  %v580_v0 = vcvt.s32.f32 %v324_v45  ;;  %v330_v54 = vunpack.c.2.s8 %v3819_v53 }
  0xd5   : > { %2047 = vmatmul.mubr.bf16.gmra.mxu1 %v4715_v31  ;;  %1893 = vmatprep.mubr.bf16.mxu0 %v4717_v23  ;;  %v835_v61 = vadd.f32 %v834_v21, %v572_v17  ;;  %v841_v41 = vadd.f32 %v840_v47, %v577_v40  ;;  %v584_v55 = vcvt.s32.f32 %v328_v33  ;;  %v847_v31 = vadd.f32 %v582_v63, %v581_v49 }
  0xd6   : > { %2054 = vmatprep.mubr.bf16.mxu1 %v4719_v1  ;;  %v331_v32 = vunpack.c.2.s8 %v4706_v60  ;;  %v332_v18 = vunpack.c.2.s8 %v4707_v5  ;;  %v333_v56 = vunpack.c.3.s8 %v3656_v11  ;;  %v334_v2 = vunpack.c.3.s8 %v3648_v6 }
  0xd7   : > { %836 = vadd.xlane.f32.xlu0 %v835_v61  ;;  %v842_v1 = vadd.f32 %v841_v41, %v578_v43  ;;  %v585_v34 = vcvt.s32.f32 %v329_v20  ;;  %v848_v44 = vadd.f32 %v847_v31, %v583_v39  ;;  %v335_v25 = vunpack.c.3.s8 %v3659_v12  ;;  %v4720_v43 = vld [vmem:[#allocation16_spill] sm:$0xff]  ;;  %v4722_v12 = vld [vmem:[#allocation17_spill] sm:$0xff] }
  0xd8   : > { %v586_v40 = vcvt.s32.f32 %v330_v54  ;;  %v336_v33 = vunpack.c.3.s8 %v3651_v7  ;;  %v589_v47 = vcvt.s32.f32 %v333_v56  ;;  %v590_v63 = vcvt.s32.f32 %v334_v2  ;;  %v4088_v7 = vld [vmem:[%s3599_s24 + $0x1b8] sm:$0xff] }
  0xd9   : > { %v843_v49 = vadd.f32 %v842_v1, %v579_v57  ;;  %v849_v21 = vadd.f32 %v848_v44, %v584_v55  ;;  %v587_v11 = vcvt.s32.f32 %v331_v32  ;;  %v588_v23 = vcvt.s32.f32 %v332_v18  ;;  %v4726_v44 = vld [vmem:[#allocation11_spill] sm:$0xff] }
  0xda   : > { %v337_v6 = vunpack.c.3.s8 %v3829_v35  ;;  %v591_v41 = vcvt.s32.f32 %v335_v25  ;;  %v4721_v20 = vunpack.c.l.s8.bf16 %v4720_v43  ;;  %v4723_v39 = vunpack.c.l.s8.bf16 %v4722_v12 }
  0xdb   : > { %v844_v61 = vadd.f32 %v843_v49, %v580_v0  ;;  %v850_v54 = vadd.f32 %v849_v21, %v585_v34  ;;  %v338_v57 = vunpack.c.3.s8 %v3819_v53  ;;  %v4724_v55 = vunpack.c.h.s8.bf16 %v4716_v10  ;;  %v4072_v34 = vld [vmem:[%s3599_s24 + $0xc8] sm:$0xff] }
  0xdc   : > { %1894 = vmatmul.mubr.bf16.gmra.mxu0 %v4721_v20  ;;  %v4725_v31 = vunpack.c.h.s8.bf16 %v4718_v46  ;;  %v339_v32 = vunpack.c.3.s8 %v4706_v60  ;;  %v592_v18 = vcvt.s32.f32 %v336_v33  ;;  %v856_v56 = vadd.f32 %v590_v63, %v589_v47  ;;  %v4078_v20 = vld [vmem:[%s3599_s24 + $0x1a8] sm:$0xff]  ;;  %v4081_v33 = vld [vmem:[%s3599_s24 + $0xd8] sm:$0xff] }
  0xdd   : > { %2055 = vmatmul.mubr.bf16.gmra.mxu1 %v4723_v39  ;;  %1901 = vmatprep.mubr.bf16.mxu0 %v4724_v55  ;;  %v341_v2 = vunpack.c.0.s8 %v3670_v19  ;;  %v851_v0 = vadd.f32 %v850_v54, %v586_v40  ;;  %v340_v1 = vunpack.c.3.s8 %v4707_v5  ;;  %v342_v10 = vunpack.c.0.s8 %v4072_v34 }
  0xde   : > { %2062 = vmatprep.mubr.bf16.mxu1 %v4725_v31  ;;  %845 = vadd.xlane.f32.xlu1 %v844_v61  ;;  %v343_v25 = vunpack.c.0.s8 %v4726_v44  ;;  %v593_v49 = vcvt.s32.f32 %v337_v6  ;;  %v857_v21 = vadd.f32 %v856_v56, %v591_v41  ;;  %v344_v19 = vunpack.c.0.s8 %v4081_v33 }
  0xdf   : > { %v852_v40 = vadd.f32 %v851_v0, %v587_v11  ;;  %v594_v47 = vcvt.s32.f32 %v338_v57  ;;  %v597_v63 = vcvt.s32.f32 %v341_v2  ;;  %v598_v39 = vcvt.s32.f32 %v342_v10  ;;  %v4097_v0 = vld [vmem:[%s3599_s24 + $0xc0] sm:$0xff] }
  0xe0   : > { %v595_v61 = vcvt.s32.f32 %v339_v32  ;;  %v858_v54 = vadd.f32 %v857_v21, %v592_v18  ;;  %v345_v55 = vunpack.c.0.s8 %v3870_v3  ;;  %v599_v31 = vcvt.s32.f32 %v343_v25  ;;  %v4102_v25 = vld [vmem:[%s3599_s24 + $0xd0] sm:$0xff] }
  0xe1   : > { %v853_v6 = vadd.f32 %v852_v40, %v588_v23  ;;  %v596_v41 = vcvt.s32.f32 %v340_v1  ;;  %v346_v44 = vunpack.c.0.s8 %v3845_v48  ;;  %v347_v11 = vunpack.c.0.s8 %v3878_v28 }
  0xe2   : > { %v859_v46 = vadd.f32 %v858_v54, %v593_v49  ;;  %v600_v57 = vcvt.s32.f32 %v344_v19  ;;  %v865_v2 = vadd.f32 %v598_v39, %v597_v63  ;;  %v4727_v32 = vunpack.c.h.s8.bf16 %v4720_v43 }
  0xe3   : > { %v4728_v18 = vunpack.c.h.s8.bf16 %v4722_v12  ;;  %v348_v23 = vunpack.c.0.s8 %v3848_v36  ;;  %v349_v1 = vunpack.c.1.s8 %v4097_v0  ;;  %v350_v10 = vunpack.c.1.s8 %v4072_v34  ;;  %854 = vadd.xlane.f32.xlu0 %v853_v6  ;;  %v4115_v6 = vld [vmem:[%s3599_s24 + $0x1a0] sm:$0xff] }
  0xe4   : > { %1902 = vmatmul.mubr.bf16.gmra.mxu0 %v4727_v32  ;;  %v351_v49 = vunpack.c.1.s8 %v4102_v25  ;;  %v4729_v21 = vunpack.c.l.s8.bf16 %v3776_v62  ;;  %v4730_v43 = vunpack.c.l.s8.bf16 %v3780_v14  ;;  %v860_v12 = vadd.f32 %v859_v46, %v594_v47 }
  0xe5   : > { %2063 = vmatmul.mubr.bf16.gmra.mxu1 %v4728_v18  ;;  %v601_v19 = vcvt.s32.f32 %v345_v55  ;;  %v866_v40 = vadd.f32 %v865_v2, %v599_v31  ;;  %v352_v63 = vunpack.c.1.s8 %v4081_v33  ;;  %v602_v54 = vcvt.s32.f32 %v346_v44 }
  0xe6   : > { %2103 = vmatprep.mubr.bf16.mxu0 %v4729_v21  ;;  %2264 = vmatprep.mubr.bf16.mxu1 %v4730_v43  ;;  %v605_v32 = vcvt.s32.f32 %v349_v1  ;;  %v606_v18 = vcvt.s32.f32 %v350_v10  ;;  %v861_v56 = vadd.f32 %v860_v12, %v595_v61  ;;  %v353_v45 = vunpack.c.1.s8 %v3870_v3 }
  0xe7   : > { %v867_v17 = vadd.f32 %v866_v40, %v600_v57  ;;  %v607_v21 = vcvt.s32.f32 %v351_v49  ;;  %v603_v58 = vcvt.s32.f32 %v347_v11  ;;  %v604_v43 = vcvt.s32.f32 %v348_v23  ;;  %v4122_v23 = vld [vmem:[%s3599_s24 + $0x1b0] sm:$0xff] }
  0xe8   : > { %v354_v46 = vunpack.c.1.s8 %v3845_v48  ;;  %v355_v47 = vunpack.c.1.s8 %v3878_v28  ;;  %v862_v55 = vadd.f32 %v861_v56, %v596_v41  ;;  %v608_v2 = vcvt.s32.f32 %v352_v63 }
  0xe9   : > { %v868_v31 = vadd.f32 %v867_v17, %v601_v19  ;;  %v874_v44 = vadd.f32 %v606_v18, %v605_v32  ;;  %v356_v1 = vunpack.c.1.s8 %v3848_v36  ;;  %v357_v61 = vunpack.c.2.s8 %v4097_v0 }
  0xea   : > { %v358_v57 = vunpack.c.2.s8 %v4072_v34  ;;  %v359_v10 = vunpack.c.2.s8 %v4102_v25  ;;  %863 = vadd.xlane.f32.xlu1 %v862_v55  ;;  %v609_v49 = vcvt.s32.f32 %v353_v45  ;;  %v360_v17 = vunpack.c.2.s8 %v4081_v33 }
  0xeb   : > { %v869_v11 = vadd.f32 %v868_v31, %v602_v54  ;;  %v875_v12 = vadd.f32 %v874_v44, %v607_v21  ;;  %v4731_v41 = vunpack.c.l.s8.bf16 %v3783_v13  ;;  %v4732_v56 = vunpack.c.l.s8.bf16 %v3786_v42 }
  0xec   : > { %v610_v40 = vcvt.s32.f32 %v354_v46  ;;  %v361_v63 = vunpack.c.2.s8 %v3870_v3  ;;  %v613_v32 = vcvt.s32.f32 %v357_v61  ;;  %v4733_v54 = vunpack.c.h.s8.bf16 %v3776_v62 }
  0xed   : > { %2104 = vmatmul.mubr.bf16.vlgmr.msra.gmra.mxu0 %v4731_v41  ;;  %2265 = vmatmul.mubr.bf16.vlgmr.msra.gmra.mxu1 %v4732_v56  ;;  %v4734_v45 = vunpack.c.h.s8.bf16 %v3780_v14  ;;  %v870_v18 = vadd.f32 %v869_v11, %v603_v58  ;;  %v876_v21 = vadd.f32 %v875_v12, %v608_v2  ;;  %v614_v55 = vcvt.s32.f32 %v358_v57 }
  0xee   : > { %2111 = vmatprep.mubr.bf16.mxu0 %v4733_v54  ;;  %v615_v31 = vcvt.s32.f32 %v359_v10  ;;  %v1211_v44 = vunpack.c.l.s8.bf16 %v4122_v23  ;;  %v611_v41 = vcvt.s32.f32 %v355_v47  ;;  %v612_v56 = vcvt.s32.f32 %v356_v1 }
  0xef   : > { %2272 = vmatprep.mubr.bf16.mxu1 %v4734_v45  ;;  %v362_v19 = vunpack.c.2.s8 %v3845_v48  ;;  %v871_v46 = vadd.f32 %v870_v18, %v604_v43  ;;  %v877_v39 = vadd.f32 %v876_v21, %v609_v49  ;;  %v616_v24 = vcvt.s32.f32 %v360_v17 }
  0xf0   : > { %v883_v61 = vadd.f32 %v614_v55, %v613_v32  ;;  %v363_v62 = vunpack.c.2.s8 %v3878_v28  ;;  %v364_v54 = vunpack.c.2.s8 %v3848_v36  ;;  %v365_v14 = vunpack.c.3.s8 %v4097_v0 }
  0xf1   : > { %v366_v58 = vunpack.c.3.s8 %v4072_v34  ;;  %872 = vadd.xlane.f32.xlu0 %v871_v46  ;;  %v878_v2 = vadd.f32 %v877_v39, %v610_v40  ;;  %v617_v57 = vcvt.s32.f32 %v361_v63  ;;  %v367_v47 = vunpack.c.3.s8 %v4102_v25 }
  0xf2   : > { %v884_v10 = vadd.f32 %v883_v61, %v615_v31  ;;  %v1218_v1 = vunpack.c.h.s8.bf16 %v4078_v20  ;;  %v1220_v43 = vunpack.c.h.s8.bf16 %v4088_v7  ;;  %v618_v11 = vcvt.s32.f32 %v362_v19 }
  0xf3   : > { %v368_v49 = vunpack.c.3.s8 %v4081_v33  ;;  %v879_v12 = vadd.f32 %v878_v2, %v611_v41  ;;  %v621_v32 = vcvt.s32.f32 %v365_v14  ;;  %v622_v45 = vcvt.s32.f32 %v366_v58  ;;  %v4158_v41 = vld [vmem:[%s3599_s24 + $0x100] sm:$0xff]  ;;  %v4167_v14 = vld [vmem:[%s3599_s24 + $0x110] sm:$0xff] }
  0xf4   : > { %v885_v17 = vadd.f32 %v884_v10, %v616_v24  ;;  %v4735_v0 = vunpack.c.h.s8.bf16 %v3783_v13  ;;  %v4736_v34 = vunpack.c.h.s8.bf16 %v3786_v42  ;;  %v619_v39 = vcvt.s32.f32 %v363_v62 }
  0xf5   : > { %v620_v25 = vcvt.s32.f32 %v364_v54  ;;  %v369_v40 = vunpack.c.3.s8 %v3870_v3  ;;  %v623_v63 = vcvt.s32.f32 %v367_v47  ;;  %v4737_v19 = vunpack.c.l.s8.bf16 %v3795_v4  ;;  %v4172_v47 = vld [vmem:[%s3599_s24 + $0x1e8] sm:$0xff] }
  0xf6   : > { %2112 = vmatmul.mubr.bf16.gmra.mxu0 %v4735_v0  ;;  %2273 = vmatmul.mubr.bf16.gmra.mxu1 %v4736_v34  ;;  %v4738_v24 = vunpack.c.l.s8.bf16 %v3798_v15  ;;  %v880_v33 = vadd.f32 %v879_v12, %v612_v56  ;;  %v886_v13 = vadd.f32 %v885_v17, %v617_v57  ;;  %v370_v42 = vunpack.c.3.s8 %v3845_v48  ;;  %v4163_v56 = vld [vmem:[%s3599_s24 + $0x108] sm:$0xff] }
  0xf7   : > { %2119 = vmatprep.mubr.bf16.mxu0 %v4737_v19  ;;  %v371_v21 = vunpack.c.3.s8 %v3878_v28  ;;  %v624_v55 = vcvt.s32.f32 %v368_v49  ;;  %v892_v31 = vadd.f32 %v622_v45, %v621_v32  ;;  %v373_v46 = vunpack.c.0.s8 %v4158_v41  ;;  %v4175_v49 = vld [vmem:[%s3599_s24 + $0x118] sm:$0xff] }
  0xf8   : > { %2280 = vmatprep.mubr.bf16.mxu1 %v4738_v24  ;;  %881 = vadd.xlane.f32.xlu1 %v880_v33  ;;  %v887_v61 = vadd.f32 %v886_v13, %v618_v11  ;;  %v372_v62 = vunpack.c.3.s8 %v3848_v36  ;;  %v374_v54 = vunpack.c.0.s8 %v4163_v56  ;;  %v375_v58 = vunpack.c.0.s8 %v4167_v14 }
  0xf9   : > { %v625_v57 = vcvt.s32.f32 %v369_v40  ;;  %v893_v10 = vadd.f32 %v892_v31, %v623_v63  ;;  %v376_v11 = vunpack.c.0.s8 %v4175_v49  ;;  %v626_v17 = vcvt.s32.f32 %v370_v42  ;;  %v4186_v42 = vld [vmem:[%s3599_s24 + $0x1f8] sm:$0xff] }
  0xfa   : > { %v888_v12 = vadd.f32 %v887_v61, %v619_v39  ;;  %v629_v32 = vcvt.s32.f32 %v373_v46  ;;  %v630_v45 = vcvt.s32.f32 %v374_v54  ;;  %v627_v0 = vcvt.s32.f32 %v371_v21 }
  0xfb   : > { %v894_v34 = vadd.f32 %v893_v10, %v624_v55  ;;  %v377_v19 = vunpack.c.0.s8 %v3951_v30  ;;  %v631_v24 = vcvt.s32.f32 %v375_v58  ;;  %v628_v13 = vcvt.s32.f32 %v372_v62 }
  0xfc   : > { %v889_v33 = vadd.f32 %v888_v12, %v620_v25  ;;  %v378_v63 = vunpack.c.0.s8 %v3923_v37  ;;  %v4739_v31 = vunpack.c.l.s8.bf16 %v3808_v59  ;;  %v4740_v2 = vunpack.c.l.s8.bf16 %v3811_v29 }
  0xfd   : > { %v895_v39 = vadd.f32 %v894_v34, %v625_v57  ;;  %v379_v21 = vunpack.c.0.s8 %v3958_v9  ;;  %v632_v55 = vcvt.s32.f32 %v376_v11  ;;  %v901_v46 = vadd.f32 %v630_v45, %v629_v32 }
  0xfe   : > { %2120 = vmatmul.mubr.bf16.gmra.mxu0 %v4739_v31  ;;  %2281 = vmatmul.mubr.bf16.gmra.mxu1 %v4740_v2  ;;  %v4741_v25 = vunpack.c.h.s8.bf16 %v3795_v4  ;;  %v4742_v61 = vunpack.c.h.s8.bf16 %v3798_v15  ;;  %v380_v62 = vunpack.c.0.s8 %v3930_v50  ;;  %v381_v54 = vunpack.c.1.s8 %v4158_v41 }
  0xff   : > { %v382_v58 = vunpack.c.1.s8 %v4163_v56  ;;  %v383_v2 = vunpack.c.1.s8 %v4167_v14  ;;  %890 = vadd.xlane.f32.xlu0 %v889_v33  ;;  %v896_v57 = vadd.f32 %v895_v39, %v626_v17  ;;  %v633_v10 = vcvt.s32.f32 %v377_v19  ;;  %v4203_v39 = vld [vmem:[%s3599_s24 + $0x1e0] sm:$0xff] }
 0x100   : > { %2127 = vmatprep.mubr.bf16.mxu0 %v4741_v25  ;;  %2288 = vmatprep.mubr.bf16.mxu1 %v4742_v61  ;;  %v902_v12 = vadd.f32 %v901_v46, %v631_v24  ;;  %v384_v11 = vunpack.c.1.s8 %v4175_v49  ;;  %v634_v32 = vcvt.s32.f32 %v378_v63  ;;  %v637_v15 = vcvt.s32.f32 %v381_v54 }
 0x101   : > { %v638_v45 = vcvt.s32.f32 %v382_v58  ;;  %v897_v34 = vadd.f32 %v896_v57, %v627_v0  ;;  %v385_v25 = vunpack.c.1.s8 %v3951_v30  ;;  %v639_v61 = vcvt.s32.f32 %v383_v2 }
 0x102   : > { %v903_v31 = vadd.f32 %v902_v12, %v632_v55  ;;  %v635_v40 = vcvt.s32.f32 %v379_v21  ;;  %v636_v18 = vcvt.s32.f32 %v380_v62  ;;  %v386_v33 = vunpack.c.1.s8 %v3923_v37 }
 0x103   : > { %v387_v17 = vunpack.c.1.s8 %v3958_v9  ;;  %v898_v19 = vadd.f32 %v897_v34, %v628_v13  ;;  %v640_v46 = vcvt.s32.f32 %v384_v11  ;;  %v910_v4 = vadd.f32 %v638_v45, %v637_v15 }
 0x104   : > { %v904_v24 = vadd.f32 %v903_v31, %v633_v10  ;;  %v388_v63 = vunpack.c.1.s8 %v3930_v50  ;;  %v389_v0 = vunpack.c.2.s8 %v4158_v41  ;;  %v390_v55 = vunpack.c.2.s8 %v4163_v56 }
 0x105   : > { %v391_v54 = vunpack.c.2.s8 %v4167_v14  ;;  %v4743_v21 = vunpack.c.h.s8.bf16 %v3808_v59  ;;  %v4744_v62 = vunpack.c.h.s8.bf16 %v3811_v29  ;;  %v641_v58 = vcvt.s32.f32 %v385_v25  ;;  %899 = vadd.xlane.f32.xlu1 %v898_v19 }
 0x106   : > { %v905_v13 = vadd.f32 %v904_v24, %v634_v32  ;;  %v911_v2 = vadd.f32 %v910_v4, %v639_v61  ;;  %v392_v57 = vunpack.c.2.s8 %v4175_v49  ;;  %v4745_v10 = vunpack.c.l.s8.bf16 %v3819_v53 }
 0x107   : > { %2128 = vmatmul.mubr.bf16.gmra.mxu0 %v4743_v21  ;;  %2289 = vmatmul.mubr.bf16.gmra.mxu1 %v4744_v62  ;;  %v4746_v12 = vunpack.c.l.s8.bf16 %v4707_v5  ;;  %v642_v15 = vcvt.s32.f32 %v386_v33  ;;  %v393_v59 = vunpack.c.2.s8 %v3951_v30  ;;  %v645_v45 = vcvt.s32.f32 %v389_v0  ;;  %v4223_v62 = vld [vmem:[%s3599_s24 + $0x1f0] sm:$0xff] }
 0x108   : > { %2135 = vmatprep.mubr.bf16.mxu0 %v4745_v10  ;;  %v906_v29 = vadd.f32 %v905_v13, %v635_v40  ;;  %v912_v32 = vadd.f32 %v911_v2, %v640_v46  ;;  %v646_v34 = vcvt.s32.f32 %v390_v55  ;;  %v647_v4 = vcvt.s32.f32 %v391_v54 }
 0x109   : > { %2296 = vmatprep.mubr.bf16.mxu1 %v4746_v12  ;;  %v643_v31 = vcvt.s32.f32 %v387_v17  ;;  %v644_v25 = vcvt.s32.f32 %v388_v63  ;;  %v394_v61 = vunpack.c.2.s8 %v3923_v37  ;;  %v395_v24 = vunpack.c.2.s8 %v3958_v9 }
 0x10a   : > { %v907_v21 = vadd.f32 %v906_v29, %v636_v18  ;;  %v913_v10 = vadd.f32 %v912_v32, %v641_v58  ;;  %v648_v12 = vcvt.s32.f32 %v392_v57  ;;  %v919_v33 = vadd.f32 %v646_v34, %v645_v45 }
 0x10b   : > { %v396_v11 = vunpack.c.2.s8 %v3930_v50  ;;  %v649_v0 = vcvt.s32.f32 %v393_v59  ;;  %v397_v40 = vunpack.c.3.s8 %v4158_v41  ;;  %v398_v19 = vunpack.c.3.s8 %v4163_v56 }
 0x10c   : > { %908 = vadd.xlane.f32.xlu0 %v907_v21  ;;  %v914_v17 = vadd.f32 %v913_v10, %v642_v15  ;;  %v920_v46 = vadd.f32 %v919_v33, %v647_v4  ;;  %v399_v63 = vunpack.c.3.s8 %v4167_v14  ;;  %v400_v55 = vunpack.c.3.s8 %v4175_v49  ;;  %v4248_v33 = vld [vmem:[%s3599_s24 + $0x148] sm:$0xff] }
 0x10d   : > { %v1227_v18 = vunpack.c.l.s8.bf16 %v4223_v62  ;;  %v650_v54 = vcvt.s32.f32 %v394_v61  ;;  %v401_v13 = vunpack.c.3.s8 %v3951_v30  ;;  %v402_v58 = vunpack.c.3.s8 %v3923_v37 }
 0x10e   : > { %v4747_v2 = vunpack.c.l.s8.bf16 %v3829_v35  ;;  %v4748_v41 = vunpack.c.l.s8.bf16 %v4706_v60  ;;  %v915_v56 = vadd.f32 %v914_v17, %v643_v31  ;;  %v921_v57 = vadd.f32 %v920_v46, %v648_v12  ;;  %v4244_v12 = vld [vmem:[%s3599_s24 + $0x140] sm:$0xff] }
 0x10f   : > { %v653_v14 = vcvt.s32.f32 %v397_v40  ;;  %v654_v15 = vcvt.s32.f32 %v398_v19  ;;  %v4749_v49 = vunpack.c.h.s8.bf16 %v3819_v53  ;;  %v4750_v59 = vunpack.c.h.s8.bf16 %v4707_v5  ;;  %v4256_v19 = vld [vmem:[%s3599_s24 + $0x158] sm:$0xff] }
 0x110   : > { %2136 = vmatmul.mubr.bf16.gmra.mxu0 %v4747_v2  ;;  %2297 = vmatmul.mubr.bf16.gmra.mxu1 %v4748_v41  ;;  %v651_v45 = vcvt.s32.f32 %v395_v24  ;;  %v652_v29 = vcvt.s32.f32 %v396_v11  ;;  %v403_v32 = vunpack.c.3.s8 %v3958_v9  ;;  %v655_v34 = vcvt.s32.f32 %v399_v63  ;;  %v4252_v24 = vld [vmem:[%s3599_s24 + $0x150] sm:$0xff] }
 0x111   : > { %2143 = vmatprep.mubr.bf16.mxu0 %v4749_v49  ;;  %2304 = vmatprep.mubr.bf16.mxu1 %v4750_v59  ;;  %v916_v4 = vadd.f32 %v915_v56, %v644_v25  ;;  %v922_v61 = vadd.f32 %v921_v57, %v649_v0  ;;  %v404_v31 = vunpack.c.3.s8 %v3930_v50  ;;  %v656_v21 = vcvt.s32.f32 %v400_v55 }
 0x112   : > { %v928_v10 = vadd.f32 %v654_v15, %v653_v14  ;;  %v405_v53 = vunpack.c.0.s8 %v4244_v12  ;;  %v406_v5 = vunpack.c.0.s8 %v4248_v33  ;;  %v407_v11 = vunpack.c.0.s8 %v4252_v24 }
 0x113   : > { %917 = vadd.xlane.f32.xlu1 %v916_v4  ;;  %v923_v40 = vadd.f32 %v922_v61, %v650_v54  ;;  %v657_v25 = vcvt.s32.f32 %v401_v13  ;;  %v658_v0 = vcvt.s32.f32 %v402_v58  ;;  %v408_v17 = vunpack.c.0.s8 %v4256_v19 }
 0x114   : > { %v929_v46 = vadd.f32 %v928_v10, %v655_v34  ;;  %v409_v63 = vunpack.c.0.s8 %v4027_v51  ;;  %v410_v55 = vunpack.c.0.s8 %v3999_v16  ;;  %v661_v2 = vcvt.s32.f32 %v405_v53 }
 0x115   : > { %v924_v41 = vadd.f32 %v923_v40, %v651_v45  ;;  %v411_v56 = vunpack.c.0.s8 %v4034_v27  ;;  %v662_v57 = vcvt.s32.f32 %v406_v5  ;;  %v663_v14 = vcvt.s32.f32 %v407_v11 }
 0x116   : > { %v659_v15 = vcvt.s32.f32 %v403_v32  ;;  %v660_v49 = vcvt.s32.f32 %v404_v31  ;;  %v930_v54 = vadd.f32 %v929_v46, %v656_v21  ;;  %v412_v13 = vunpack.c.0.s8 %v4006_v22 }
 0x117   : > { %v4751_v58 = vunpack.c.h.s8.bf16 %v3829_v35  ;;  %v4752_v59 = vunpack.c.h.s8.bf16 %v4706_v60  ;;  %v925_v34 = vadd.f32 %v924_v41, %v652_v29  ;;  %v664_v4 = vcvt.s32.f32 %v408_v17 }
 0x118   : > { %v937_v61 = vadd.f32 %v662_v57, %v661_v2  ;;  %v413_v45 = vunpack.c.1.s8 %v4244_v12  ;;  %v4753_v10 = vunpack.c.l.s8.bf16 %v3845_v48  ;;  %v4754_v32 = vunpack.c.l.s8.bf16 %v3848_v36 }
 0x119   : > { %2144 = vmatmul.mubr.bf16.gmra.mxu0 %v4751_v58  ;;  %2305 = vmatmul.mubr.bf16.gmra.mxu1 %v4752_v59  ;;  %v931_v31 = vadd.f32 %v930_v54, %v657_v25  ;;  %v414_v21 = vunpack.c.1.s8 %v4248_v33  ;;  %v415_v35 = vunpack.c.1.s8 %v4252_v24  ;;  %v416_v53 = vunpack.c.1.s8 %v4256_v19 }
 0x11a   : > { %2151 = vmatprep.mubr.bf16.mxu0 %v4753_v10  ;;  %2312 = vmatprep.mubr.bf16.mxu1 %v4754_v32  ;;  %v665_v60 = vcvt.s32.f32 %v409_v63  ;;  %v666_v29 = vcvt.s32.f32 %v410_v55  ;;  %v667_v5 = vcvt.s32.f32 %v411_v56  ;;  %v938_v11 = vadd.f32 %v937_v61, %v663_v14 }
 0x11b   : > { %926 = vadd.xlane.f32.xlu0 %v925_v34  ;;  %v932_v40 = vadd.f32 %v931_v31, %v658_v0  ;;  %v417_v17 = vunpack.c.1.s8 %v4027_v51  ;;  %v669_v46 = vcvt.s32.f32 %v413_v45  ;;  %v670_v2 = vcvt.s32.f32 %v414_v21 }
 0x11c   : > { %v939_v41 = vadd.f32 %v938_v11, %v664_v4  ;;  %v418_v57 = vunpack.c.1.s8 %v3999_v16  ;;  %v419_v25 = vunpack.c.1.s8 %v4034_v27  ;;  %v671_v54 = vcvt.s32.f32 %v415_v35 }
 0x11d   : > { %v933_v58 = vadd.f32 %v932_v40, %v659_v15  ;;  %v668_v59 = vcvt.s32.f32 %v412_v13  ;;  %v420_v10 = vunpack.c.1.s8 %v4006_v22  ;;  %v672_v34 = vcvt.s32.f32 %v416_v53 }
 0x11e   : > { %v940_v63 = vadd.f32 %v939_v41, %v665_v60  ;;  %v946_v55 = vadd.f32 %v670_v2, %v669_v46  ;;  %v421_v56 = vunpack.c.2.s8 %v4244_v12  ;;  %v422_v0 = vunpack.c.2.s8 %v4248_v33 }
 0x11f   : > { %v934_v14 = vadd.f32 %v933_v58, %v660_v49  ;;  %v673_v61 = vcvt.s32.f32 %v417_v17  ;;  %v423_v4 = vunpack.c.2.s8 %v4252_v24  ;;  %v424_v45 = vunpack.c.2.s8 %v4256_v19 }
 0x120   : > { %v4755_v32 = vunpack.c.l.s8.bf16 %v3870_v3  ;;  %v4756_v15 = vunpack.c.l.s8.bf16 %v3878_v28  ;;  %v941_v13 = vadd.f32 %v940_v63, %v666_v29  ;;  %v674_v31 = vcvt.s32.f32 %v418_v57 }
 0x121   : > { %v675_v21 = vcvt.s32.f32 %v419_v25  ;;  %v947_v35 = vadd.f32 %v946_v55, %v671_v54  ;;  %v425_v49 = vunpack.c.2.s8 %v4027_v51  ;;  %v677_v53 = vcvt.s32.f32 %v421_v56  ;;  %935 = vadd.xlane.f32.xlu1 %v934_v14 }
 0x122   : > { %2152 = vmatmul.mubr.bf16.gmra.mxu0 %v4755_v32  ;;  %2313 = vmatmul.mubr.bf16.gmra.mxu1 %v4756_v15  ;;  %v678_v60 = vcvt.s32.f32 %v422_v0  ;;  %v679_v11 = vcvt.s32.f32 %v423_v4  ;;  %v942_v40 = vadd.f32 %v941_v13, %v667_v5  ;;  %v426_v46 = vunpack.c.2.s8 %v3999_v16 }
 0x123   : > { %2159 = vmatprep.mubr.bf16.mxu0 %v1170_v26  ;;  %2320 = vmatprep.mubr.bf16.mxu1 %v1172_v52  ;;  %v948_v17 = vadd.f32 %v947_v35, %v672_v34  ;;  %v427_v29 = vunpack.c.2.s8 %v4034_v27  ;;  %v676_v2 = vcvt.s32.f32 %v420_v10  ;;  %v428_v41 = vunpack.c.2.s8 %v4006_v22  ;;  %v4316_v35 = vld [vmem:[%s3599_s24 + $0x188] sm:$0xff] }
 0x124   : > { %v680_v48 = vcvt.s32.f32 %v424_v45  ;;  %v955_v26 = vadd.f32 %v678_v60, %v677_v53  ;;  %v943_v57 = vadd.f32 %v942_v40, %v668_v59  ;;  %v429_v52 = vunpack.c.3.s8 %v4244_v12  ;;  %v4320_v53 = vld [vmem:[%s3599_s24 + $0x190] sm:$0xff] }
 0x125   : > { %v949_v36 = vadd.f32 %v948_v17, %v673_v61  ;;  %v430_v25 = vunpack.c.3.s8 %v4248_v33  ;;  %v681_v54 = vcvt.s32.f32 %v425_v49  ;;  %v431_v5 = vunpack.c.3.s8 %v4252_v24 }
 0x126   : > { %v956_v58 = vadd.f32 %v955_v26, %v679_v11  ;;  %v432_v34 = vunpack.c.3.s8 %v4256_v19  ;;  %944 = vadd.xlane.f32.xlu0 %v943_v57  ;;  %v682_v55 = vcvt.s32.f32 %v426_v46  ;;  %v683_v10 = vcvt.s32.f32 %v427_v29  ;;  %v4324_v46 = vld [vmem:[%s3599_s24 + $0x198] sm:$0xff] }
 0x127   : > { %v950_v63 = vadd.f32 %v949_v36, %v674_v31  ;;  %v433_v56 = vunpack.c.3.s8 %v4027_v51  ;;  %v685_v14 = vcvt.s32.f32 %v429_v52  ;;  %v686_v59 = vcvt.s32.f32 %v430_v25  ;;  %v4312_v31 = vld [vmem:[%s3599_s24 + $0x180] sm:$0xff] }
 0x128   : > { %v957_v0 = vadd.f32 %v956_v58, %v680_v48  ;;  %v687_v61 = vcvt.s32.f32 %v431_v5  ;;  %v4757_v12 = vunpack.c.h.s8.bf16 %v3878_v28  ;;  %v684_v24 = vcvt.s32.f32 %v428_v41 }
 0x129   : > { %v951_v33 = vadd.f32 %v950_v63, %v675_v21  ;;  %v434_v19 = vunpack.c.3.s8 %v3999_v16  ;;  %v435_v4 = vunpack.c.3.s8 %v4034_v27  ;;  %v4758_v45 = vunpack.c.l.s8.bf16 %v3923_v37 }
 0x12a   : > { %2160 = vmatmul.mubr.bf16.gmra.mxu0 %v1169_v38  ;;  %2321 = vmatmul.mubr.bf16.gmra.mxu1 %v4757_v12  ;;  %v4759_v32 = vunpack.c.l.s8.bf16 %v3930_v50  ;;  %v958_v3 = vadd.f32 %v957_v0, %v681_v54  ;;  %v436_v38 = vunpack.c.3.s8 %v4006_v22  ;;  %v688_v15 = vcvt.s32.f32 %v432_v34 }
 0x12b   : > { %2167 = vmatprep.mubr.bf16.mxu0 %v4758_v45  ;;  %v964_v28 = vadd.f32 %v686_v59, %v685_v14  ;;  %v952_v13 = vadd.f32 %v951_v33, %v676_v2  ;;  %v437_v21 = vunpack.c.0.s8 %v4312_v31  ;;  %v438_v49 = vunpack.c.0.s8 %v4316_v35 }
 0x12c   : > { %2328 = vmatprep.mubr.bf16.mxu1 %v4759_v32  ;;  %v439_v60 = vunpack.c.0.s8 %v4320_v53  ;;  %v959_v11 = vadd.f32 %v958_v3, %v682_v55  ;;  %v689_v40 = vcvt.s32.f32 %v433_v56  ;;  %v440_v29 = vunpack.c.0.s8 %v4324_v46  ;;  %v2686_v14 = vpop.f32.mrf.mxu0 }
 0x12d   : > { %v965_v17 = vadd.f32 %v964_v28, %v687_v61  ;;  %953 = vadd.xlane.f32.xlu1 %v952_v13  ;;  %v690_v2 = vcvt.s32.f32 %v434_v19  ;;  %v441_v41 = vunpack.c.0.s8 %v4115_v6  ;;  %v442_v48 = vunpack.c.0.s8 %v4078_v20  ;;  %v2798_v59 = vpop.f32.mrf.mxu1 }
 0x12e   : > { %v693_v26 = vcvt.s32.f32 %v437_v21  ;;  %v960_v57 = vadd.f32 %v959_v11, %v683_v10  ;;  %v694_v52 = vcvt.s32.f32 %v438_v49  ;;  %v695_v25 = vcvt.s32.f32 %v439_v60 }
 0x12f   : > { %v966_v36 = vadd.f32 %v965_v17, %v688_v15  ;;  %v1234_v54 = vunpack.c.h.s8.bf16 %v4172_v47  ;;  %v691_v58 = vcvt.s32.f32 %v435_v4  ;;  %v692_v5 = vcvt.s32.f32 %v436_v38  ;;  %v2687_v38 = vpop.f32.mrf.mxu0  ;;  %v2799_v15 = vpop.f32.mrf.mxu1 }
 0x130   : > { %v443_v34 = vunpack.c.0.s8 %v4122_v23  ;;  %v961_v63 = vadd.f32 %v960_v57, %v684_v24  ;;  %v696_v56 = vcvt.s32.f32 %v440_v29  ;;  %v973_v0 = vadd.f32 %v694_v52, %v693_v26 }
 0x131   : > { %v967_v55 = vadd.f32 %v966_v36, %v689_v40  ;;  %v4760_v10 = vunpack.c.l.s8.bf16 %v3958_v9  ;;  %v444_v61 = vunpack.c.0.s8 %v4088_v7  ;;  %v445_v12 = vunpack.c.1.s8 %v4312_v31  ;;  %v2689_v17 = vpop.f32.mrf.mxu0  ;;  %v2801_v29 = vpop.f32.mrf.mxu1 }
 0x132   : > { %2168 = vmatmul.mubr.bf16.gmra.mxu0 %v1177_v8  ;;  %v446_v33 = vunpack.c.1.s8 %v4316_v35  ;;  %v447_v19 = vunpack.c.1.s8 %v4320_v53  ;;  %v4761_v24 = vunpack.c.h.s8.bf16 %v3923_v37  ;;  %v4762_v4 = vunpack.c.h.s8.bf16 %v3930_v50  ;;  %962 = vadd.xlane.f32.xlu0 %v961_v63 }
 0x133   : > { %2329 = vmatmul.mubr.bf16.gmra.mxu1 %v4760_v10  ;;  %v968_v45 = vadd.f32 %v967_v55, %v690_v2  ;;  %v697_v32 = vcvt.s32.f32 %v441_v41  ;;  %v698_v8 = vcvt.s32.f32 %v442_v48  ;;  %v974_v3 = vadd.f32 %v973_v0, %v695_v25  ;;  %v2690_v25 = vpop.f32.mrf.mxu0 }
 0x134   : > { %2175 = vmatprep.mubr.bf16.mxu0 %v4761_v24  ;;  %2336 = vmatprep.mubr.bf16.mxu1 %v4762_v4  ;;  %v699_v28 = vcvt.s32.f32 %v443_v34  ;;  %v448_v13 = vunpack.c.1.s8 %v4324_v46  ;;  %v701_v21 = vcvt.s32.f32 %v445_v12  ;;  %v702_v49 = vcvt.s32.f32 %v446_v33  ;;  %v2802_v34 = vpop.f32.mrf.mxu1 }
 0x135   : > { %v2688_v60 = vadd.f32 %v2687_v38, %v2686_v14  ;;  %v2800_v11 = vadd.f32 %v2799_v15, %v2798_v59  ;;  %v969_v40 = vadd.f32 %v968_v45, %v691_v58  ;;  %v975_v37 = vadd.f32 %v974_v3, %v696_v56 }
 0x136   : > { %v700_v50 = vcvt.s32.f32 %v444_v61  ;;  %v449_v2 = vunpack.c.1.s8 %v4115_v6  ;;  %v450_v41 = vunpack.c.1.s8 %v4078_v20  ;;  %v703_v48 = vcvt.s32.f32 %v447_v19  ;;  %v2692_v61 = vpop.f32.mrf.mxu0  ;;  %v2804_v12 = vpop.f32.mrf.mxu1 }
 0x137   : > { %v4346_v26 = vadd.f32 %v2800_v11, %v2688_v60  ;;  %v970_v57 = vadd.f32 %v969_v40, %v692_v5  ;;  %v976_v36 = vadd.f32 %v975_v37, %v697_v32  ;;  %v451_v52 = vunpack.c.1.s8 %v4122_v23 }
 0x138   : > { %v704_v63 = vcvt.s32.f32 %v448_v13  ;;  %v982_v55 = vadd.f32 %v702_v49, %v701_v21  ;;  %v453_v58 = vunpack.c.2.s8 %v4312_v31  ;;  %v454_v56 = vunpack.c.2.s8 %v4316_v35  ;;  %v2693_v13 = vpop.f32.mrf.mxu0 }
 0x139   : > { %v2691_v0 = vadd.f32 %v2690_v25, %v2689_v17  ;;  %v2803_v14 = vadd.f32 %v2802_v34, %v2801_v29  ;;  %971 = vadd.xlane.f32.xlu1 %v970_v57  ;;  %v977_v59 = vadd.f32 %v976_v36, %v698_v8  ;;  %v455_v10 = vunpack.c.2.s8 %v4320_v53 }
 0x13a   : > { %v4763_v5 = vunpack.c.h.s8.bf16 %v3951_v30  ;;  %v4764_v33 = vunpack.c.h.s8.bf16 %v3958_v9  ;;  %v452_v19 = vunpack.c.1.s8 %v4088_v7  ;;  %v705_v24 = vcvt.s32.f32 %v449_v2  ;;  %v2805_v9 = vpop.f32.mrf.mxu1  ;;  %v2695_v2 = vpop.f32.mrf.mxu0 }
 0x13b   : > { %v706_v4 = vcvt.s32.f32 %v450_v41  ;;  %v983_v45 = vadd.f32 %v982_v55, %v703_v48  ;;  %v4357_v32 = vadd.f32 %v2803_v14, %v2691_v0  ;;  %v4765_v3 = vunpack.c.l.s8.bf16 %v3999_v16 }
 0x13c   : > { %2176 = vmatmul.mubr.bf16.gmra.mxu0 %v4763_v5  ;;  %2337 = vmatmul.mubr.bf16.gmra.mxu1 %v4764_v33  ;;  %v4766_v8 = vunpack.c.l.s8.bf16 %v4006_v22  ;;  %v978_v38 = vadd.f32 %v977_v59, %v699_v28  ;;  %v707_v15 = vcvt.s32.f32 %v451_v52  ;;  %v456_v30 = vunpack.c.2.s8 %v4324_v46  ;;  %v2807_v41 = vpop.f32.mrf.mxu1  ;;  %v2696_v55 = vpop.f32.mrf.mxu0 }
 0x13d   : > { %2183 = vmatprep.mubr.bf16.mxu0 %v4765_v3  ;;  %v984_v21 = vadd.f32 %v983_v45, %v704_v63  ;;  %v457_v49 = vunpack.c.2.s8 %v4115_v6  ;;  %v709_v60 = vcvt.s32.f32 %v453_v58  ;;  %v710_v11 = vcvt.s32.f32 %v454_v56 }
 0x13e   : > { %2344 = vmatprep.mubr.bf16.mxu1 %v4766_v8  ;;  %v2694_v40 = vadd.f32 %v2693_v13, %v2692_v61  ;;  %v2806_v37 = vadd.f32 %v2805_v9, %v2804_v12  ;;  %v979_v17 = vadd.f32 %v978_v38, %v700_v50  ;;  %v711_v29 = vcvt.s32.f32 %v455_v10  ;;  %v2808_v58 = vpop.f32.mrf.mxu1  ;;  %v2698_v5 = vpop.f32.mrf.mxu0 }
 0x13f   : > { %v708_v48 = vcvt.s32.f32 %v452_v19  ;;  %v985_v57 = vadd.f32 %v984_v21, %v705_v24  ;;  %v458_v28 = vunpack.c.2.s8 %v4078_v20  ;;  %v459_v36 = vunpack.c.2.s8 %v4122_v23 }
 0x140   : > { %v4367_v52 = vadd.f32 %v2806_v37, %v2694_v40  ;;  %980 = vadd.xlane.f32.xlu0 %v979_v17  ;;  %v712_v25 = vcvt.s32.f32 %v456_v30  ;;  %v991_v34 = vadd.f32 %v710_v11, %v709_v60  ;;  %v461_v63 = vunpack.c.3.s8 %v4312_v31  ;;  %v2810_v33 = vpop.f32.mrf.mxu1  ;;  %v2699_v9 = vpop.f32.mrf.mxu0 }
 0x141   : > { %v986_v56 = vadd.f32 %v985_v57, %v706_v4  ;;  %v460_v50 = vunpack.c.2.s8 %v4088_v7  ;;  %v462_v0 = vunpack.c.3.s8 %v4316_v35  ;;  %v463_v14 = vunpack.c.3.s8 %v4320_v53  ;;  %v4388_v57 = vld [vmem:[%s3599_s24 + $0x1c0] sm:$0xff] }
 0x142   : > { %v2697_v59 = vadd.f32 %v2696_v55, %v2695_v2  ;;  %v2809_v10 = vadd.f32 %v2808_v58, %v2807_v41  ;;  %v713_v61 = vcvt.s32.f32 %v457_v49  ;;  %v992_v12 = vadd.f32 %v991_v34, %v711_v29  ;;  %v2811_v21 = vpop.f32.mrf.mxu1 }
 0x143   : > { %v4767_v19 = vunpack.c.l.s8.bf16 %v4027_v51  ;;  %v4768_v31 = vunpack.c.l.s8.bf16 %v4034_v27  ;;  %v987_v24 = vadd.f32 %v986_v56, %v707_v15  ;;  %v714_v4 = vcvt.s32.f32 %v458_v28 }
 0x144   : > { %v715_v45 = vcvt.s32.f32 %v459_v36  ;;  %v464_v3 = vunpack.c.3.s8 %v4324_v46  ;;  %v4378_v35 = vadd.f32 %v2809_v10, %v2697_v59  ;;  %v4769_v53 = vunpack.c.h.s8.bf16 %v3999_v16  ;;  %v2813_v17 = vpop.f32.mrf.mxu1 }
 0x145   : > { %2184 = vmatmul.mubr.bf16.gmra.mxu0 %v4767_v19  ;;  %2345 = vmatmul.mubr.bf16.gmra.mxu1 %v4768_v31  ;;  %v4770_v8 = vunpack.c.h.s8.bf16 %v4006_v22  ;;  %v993_v38 = vadd.f32 %v992_v12, %v712_v25  ;;  %v717_v30 = vcvt.s32.f32 %v461_v63  ;;  %v718_v13 = vcvt.s32.f32 %v462_v0  ;;  %v2701_v22 = vpop.f32.mrf.mxu0  ;;  %v4394_v25 = vld [vmem:[%s3599_s24 + $0x1c8] sm:$0xff]  ;;  %v4398_v63 = vld [vmem:[%s3599_s24 + $0x1d0] sm:$0xff] }
 0x146   : > { %2191 = vmatprep.mubr.bf16.mxu0 %v4769_v53  ;;  %v988_v49 = vadd.f32 %v987_v24, %v708_v48  ;;  %v465_v15 = vunpack.c.3.s8 %v4115_v6  ;;  %v466_v60 = vunpack.c.3.s8 %v4078_v20  ;;  %v719_v46 = vcvt.s32.f32 %v463_v14  ;;  %v2814_v56 = vpop.f32.mrf.mxu1 }
 0x147   : > { %2352 = vmatprep.mubr.bf16.mxu1 %v4770_v8  ;;  %v2700_v11 = vadd.f32 %v2699_v9, %v2698_v5  ;;  %v2812_v16 = vadd.f32 %v2811_v21, %v2810_v33  ;;  %v716_v40 = vcvt.s32.f32 %v460_v50  ;;  %v994_v37 = vadd.f32 %v993_v38, %v713_v61  ;;  %v2702_v58 = vpop.f32.mrf.mxu0  ;;  %v4403_v5 = vld [vmem:[%s3599_s24 + $0x1d8] sm:$0xff] }
 0x148   : > { %989 = vadd.xlane.f32.xlu1 %v988_v49  ;;  %v467_v29 = vunpack.c.3.s8 %v4122_v23  ;;  %v720_v2 = vcvt.s32.f32 %v464_v3  ;;  %v1000_v41 = vadd.f32 %v718_v13, %v717_v30  ;;  %v469_v48 = vunpack.c.0.s8 %v4388_v57  ;;  %v2816_v31 = vpop.f32.mrf.mxu1 }
 0x149   : > { %v4391_v28 = vadd.f32 %v2812_v16, %v2700_v11  ;;  %v995_v36 = vadd.f32 %v994_v37, %v714_v4  ;;  %v470_v34 = vunpack.c.0.s8 %v4394_v25  ;;  %v471_v55 = vunpack.c.0.s8 %v4398_v63  ;;  %v2704_v19 = vpop.f32.mrf.mxu0 }
 0x14a   : > { %v468_v50 = vunpack.c.3.s8 %v4088_v7  ;;  %v721_v0 = vcvt.s32.f32 %v465_v15  ;;  %v722_v14 = vcvt.s32.f32 %v466_v60  ;;  %v1001_v59 = vadd.f32 %v1000_v41, %v719_v46  ;;  %v2817_v15 = vpop.f32.mrf.mxu1 }
 0x14b   : > { %v2703_v10 = vadd.f32 %v2702_v58, %v2701_v22  ;;  %v2815_v61 = vadd.f32 %v2814_v56, %v2813_v17  ;;  %v996_v12 = vadd.f32 %v995_v36, %v715_v45  ;;  %v472_v33 = vunpack.c.0.s8 %v4403_v5  ;;  %v2705_v49 = vpop.f32.mrf.mxu0 }
 0x14c   : > { %v4771_v24 = vunpack.c.h.s8.bf16 %v4027_v51  ;;  %v4772_v4 = vunpack.c.h.s8.bf16 %v4034_v27  ;;  %v723_v3 = vcvt.s32.f32 %v467_v29  ;;  %v1002_v53 = vadd.f32 %v1001_v59, %v720_v2  ;;  %v2819_v2 = vpop.f32.mrf.mxu1 }
 0x14d   : > { %v725_v8 = vcvt.s32.f32 %v469_v48  ;;  %v726_v38 = vcvt.s32.f32 %v470_v34  ;;  %v4410_v30 = vadd.f32 %v2815_v61, %v2703_v10  ;;  %v4773_v45 = vunpack.c.l.s8.bf16 %v4078_v20  ;;  %v2707_v29 = vpop.f32.mrf.mxu0 }
 0x14e   : > { %2192 = vmatmul.mubr.bf16.gmra.mxu0 %v4771_v24  ;;  %2353 = vmatmul.mubr.bf16.gmra.mxu1 %v4772_v4  ;;  %v4774_v13 = vunpack.c.l.s8.bf16 %v4088_v7  ;;  %v997_v9 = vadd.f32 %v996_v12, %v716_v40  ;;  %v473_v21 = vunpack.c.0.s8 %v4203_v39  ;;  %v727_v51 = vcvt.s32.f32 %v471_v55 }
 0x14f   : > { %2199 = vmatprep.mubr.bf16.mxu0 %v4773_v45  ;;  %v724_v27 = vcvt.s32.f32 %v468_v50  ;;  %v1003_v60 = vadd.f32 %v1002_v53, %v721_v0  ;;  %v474_v46 = vunpack.c.0.s8 %v4172_v47  ;;  %v475_v11 = vunpack.c.0.s8 %v4223_v62  ;;  %v2708_v50 = vpop.f32.mrf.mxu0  ;;  %v2820_v0 = vpop.f32.mrf.mxu1 }
 0x150   : > { %2360 = vmatprep.mubr.bf16.mxu1 %v4774_v13  ;;  %v2706_v16 = vadd.f32 %v2705_v49, %v2704_v19  ;;  %v2818_v37 = vadd.f32 %v2817_v15, %v2816_v31  ;;  %998 = vadd.xlane.f32.xlu0 %v997_v9  ;;  %v728_v22 = vcvt.s32.f32 %v472_v33  ;;  %v1009_v17 = vadd.f32 %v726_v38, %v725_v8 }
 0x151   : > { %v1004_v41 = vadd.f32 %v1003_v60, %v722_v14  ;;  %v477_v40 = vunpack.c.1.s8 %v4388_v57  ;;  %v478_v48 = vunpack.c.1.s8 %v4394_v25  ;;  %v479_v36 = vunpack.c.1.s8 %v4398_v63  ;;  %v2710_v24 = vpop.f32.mrf.mxu0  ;;  %v2822_v4 = vpop.f32.mrf.mxu1 }
 0x152   : > { %v4422_v34 = vadd.f32 %v2818_v37, %v2706_v16  ;;  %v476_v55 = vunpack.c.0.s8 %v4186_v42  ;;  %v729_v58 = vcvt.s32.f32 %v473_v21  ;;  %v1010_v56 = vadd.f32 %v1009_v17, %v727_v51 }
 0x153   : > { %v1005_v59 = vadd.f32 %v1004_v41, %v723_v3  ;;  %v730_v10 = vcvt.s32.f32 %v474_v46  ;;  %v731_v61 = vcvt.s32.f32 %v475_v11  ;;  %v480_v12 = vunpack.c.1.s8 %v4403_v5  ;;  %v2711_v49 = vpop.f32.mrf.mxu0  ;;  %v2823_v15 = vpop.f32.mrf.mxu1 }
 0x154   : > { %v2709_v14 = vadd.f32 %v2708_v50, %v2707_v29  ;;  %v2821_v33 = vadd.f32 %v2820_v0, %v2819_v2  ;;  %v1011_v19 = vadd.f32 %v1010_v56, %v728_v22  ;;  %v733_v31 = vcvt.s32.f32 %v477_v40 }
 0x155   : > { %v4775_v53 = vunpack.c.l.s8.bf16 %v4115_v6  ;;  %v1006_v8 = vadd.f32 %v1005_v59, %v724_v27  ;;  %v481_v38 = vunpack.c.1.s8 %v4203_v39  ;;  %v734_v3 = vcvt.s32.f32 %v478_v48  ;;  %v2713_v7 = vpop.f32.mrf.mxu0 }
 0x156   : > { %2361 = vmatmul.mubr.bf16.gmra.mxu1 %v1211_v44  ;;  %v735_v45 = vcvt.s32.f32 %v479_v36  ;;  %v4431_v13 = vadd.f32 %v2821_v33, %v2709_v14  ;;  %v732_v9 = vcvt.s32.f32 %v476_v55  ;;  %v1012_v21 = vadd.f32 %v1011_v19, %v729_v58 }
 0x157   : > { %2200 = vmatmul.mubr.bf16.gmra.mxu0 %v4775_v53  ;;  %2368 = vmatprep.mubr.bf16.mxu1 %v1220_v43  ;;  %v482_v51 = vunpack.c.1.s8 %v4172_v47  ;;  %v483_v44 = vunpack.c.1.s8 %v4223_v62  ;;  %v736_v27 = vcvt.s32.f32 %v480_v12  ;;  %v1018_v60 = vadd.f32 %v734_v3, %v733_v31  ;;  %v2825_v43 = vpop.f32.mrf.mxu1  ;;  %v2714_v36 = vpop.f32.mrf.mxu0 }
 0x158   : > { %2207 = vmatprep.mubr.bf16.mxu0 %v1218_v1  ;;  %1007 = vadd.xlane.f32.xlu1 %v1006_v8  ;;  %v485_v46 = vunpack.c.2.s8 %v4388_v57  ;;  %v2712_v11 = vadd.f32 %v2711_v49, %v2710_v24  ;;  %v2824_v16 = vadd.f32 %v2823_v15, %v2822_v4  ;;  %v1013_v20 = vadd.f32 %v1012_v21, %v730_v10 }
 0x159   : > { %v486_v1 = vunpack.c.2.s8 %v4394_v25  ;;  %v484_v37 = vunpack.c.1.s8 %v4186_v42  ;;  %v737_v22 = vcvt.s32.f32 %v481_v38  ;;  %v1019_v17 = vadd.f32 %v1018_v60, %v735_v45  ;;  %v2826_v55 = vpop.f32.mrf.mxu1  ;;  %v2716_v33 = vpop.f32.mrf.mxu0 }
 0x15a   : > { %v487_v29 = vunpack.c.2.s8 %v4398_v63  ;;  %v4443_v2 = vadd.f32 %v2824_v16, %v2712_v11  ;;  %v1014_v41 = vadd.f32 %v1013_v20, %v731_v61  ;;  %v738_v40 = vcvt.s32.f32 %v482_v51 }
 0x15b   : > { %v488_v48 = vunpack.c.2.s8 %v4403_v5  ;;  %v1020_v58 = vadd.f32 %v1019_v17, %v736_v27  ;;  %v489_v56 = vunpack.c.2.s8 %v4203_v39  ;;  %v741_v50 = vcvt.s32.f32 %v485_v46  ;;  %v2828_v19 = vpop.f32.mrf.mxu1  ;;  %v2717_v51 = vpop.f32.mrf.mxu0 }
 0x15c   : > { %v742_v0 = vcvt.s32.f32 %v486_v1  ;;  %v2715_v59 = vadd.f32 %v2714_v36, %v2713_v7  ;;  %v2827_v10 = vadd.f32 %v2826_v55, %v2825_v43  ;;  %v1015_v12 = vadd.f32 %v1014_v41, %v732_v9 }
 0x15d   : > { %v743_v14 = vcvt.s32.f32 %v487_v29  ;;  %v4776_v31 = vunpack.c.h.s8.bf16 %v4115_v6  ;;  %v4777_v61 = vunpack.c.h.s8.bf16 %v4122_v23  ;;  %v739_v24 = vcvt.s32.f32 %v483_v44  ;;  %v2829_v23 = vpop.f32.mrf.mxu1  ;;  %v2719_v20 = vpop.f32.mrf.mxu0 }
 0x15e   : > { %v740_v4 = vcvt.s32.f32 %v484_v37  ;;  %v1021_v53 = vadd.f32 %v1020_v58, %v737_v22  ;;  %v490_v8 = vunpack.c.2.s8 %v4172_v47  ;;  %v4452_v38 = vadd.f32 %v2827_v10, %v2715_v59  ;;  %1016 = vadd.xlane.f32.xlu0 %v1015_v12  ;;  %v3328_v10 = vld [vmem:[%s3599_s24 + $0x1e8] sm:$0xff] }
 0x15f   : > { %2208 = vmatmul.mubr.bf16.gmra.mxu0 %v4776_v31  ;;  %2369 = vmatmul.mubr.bf16.gmra.mxu1 %v4777_v61  ;;  %v4778_v3 = vunpack.c.l.s8.bf16 %v4172_v47  ;;  %v4779_v45 = vunpack.c.l.s8.bf16 %v4186_v42  ;;  %v491_v9 = vunpack.c.2.s8 %v4223_v62  ;;  %v744_v6 = vcvt.s32.f32 %v488_v48  ;;  %v2831_v1 = vpop.f32.mrf.mxu1 }
 0x160   : > { %v1027_v21 = vadd.f32 %v742_v0, %v741_v50  ;;  %v1022_v49 = vadd.f32 %v1021_v53, %v738_v40  ;;  %v493_v15 = vunpack.c.3.s8 %v4388_v57  ;;  %v494_v44 = vunpack.c.3.s8 %v4394_v25 }
 0x161   : > { %2215 = vmatprep.mubr.bf16.mxu0 %v4778_v3  ;;  %2376 = vmatprep.mubr.bf16.mxu1 %v4779_v45  ;;  %v495_v27 = vunpack.c.3.s8 %v4398_v63  ;;  %v2718_v60 = vadd.f32 %v2717_v51, %v2716_v33  ;;  %v2830_v46 = vadd.f32 %v2829_v23, %v2828_v19  ;;  %v745_v11 = vcvt.s32.f32 %v489_v56  ;;  %v2720_v63 = vpop.f32.mrf.mxu0  ;;  %v2832_v41 = vpop.f32.mrf.mxu1 }
 0x162   : > { %v1028_v16 = vadd.f32 %v1027_v21, %v743_v14  ;;  %v1236_v7 = vunpack.c.h.s8.bf16 %v4186_v42  ;;  %v1023_v43 = vadd.f32 %v1022_v49, %v739_v24  ;;  %v492_v37 = vunpack.c.2.s8 %v4186_v42 }
 0x163   : > { %v496_v22 = vunpack.c.3.s8 %v4403_v5  ;;  %v4465_v17 = vadd.f32 %v2830_v46, %v2718_v60  ;;  %v746_v57 = vcvt.s32.f32 %v490_v8  ;;  %v749_v25 = vcvt.s32.f32 %v493_v15  ;;  %v2722_v42 = vpop.f32.mrf.mxu0  ;;  %v2834_v59 = vpop.f32.mrf.mxu1 }
 0x164   : > { %v1029_v29 = vadd.f32 %v1028_v16, %v744_v6  ;;  %v1024_v40 = vadd.f32 %v1023_v43, %v740_v4  ;;  %v497_v48 = vunpack.c.3.s8 %v4203_v39  ;;  %v750_v36 = vcvt.s32.f32 %v494_v44 }
 0x165   : > { %v751_v55 = vcvt.s32.f32 %v495_v27  ;;  %v2721_v58 = vadd.f32 %v2720_v63, %v2719_v20  ;;  %v2833_v56 = vadd.f32 %v2832_v41, %v2831_v1  ;;  %v747_v50 = vcvt.s32.f32 %v491_v9  ;;  %v2723_v24 = vpop.f32.mrf.mxu0  ;;  %v2835_v4 = vpop.f32.mrf.mxu1 }
 0x166   : > { %v1030_v0 = vadd.f32 %v1029_v29, %v745_v11  ;;  %v4780_v5 = vunpack.c.l.s8.bf16 %v4203_v39  ;;  %v498_v12 = vunpack.c.3.s8 %v3328_v10  ;;  %v752_v14 = vcvt.s32.f32 %v496_v22  ;;  %1025 = vadd.xlane.f32.xlu1 %v1024_v40 }
 0x167   : > { %2377 = vmatmul.mubr.bf16.gmra.mxu1 %v1227_v18  ;;  %v1036_v33 = vadd.f32 %v750_v36, %v749_v25  ;;  %v4473_v19 = vadd.f32 %v2833_v56, %v2721_v58  ;;  %v748_v31 = vcvt.s32.f32 %v492_v37  ;;  %v499_v53 = vunpack.c.3.s8 %v4223_v62  ;;  %v2725_v21 = vpop.f32.mrf.mxu0  ;;  %v2837_v51 = vpop.f32.mrf.mxu1 }
 0x168   : > { %2216 = vmatmul.mubr.bf16.gmra.mxu0 %v4780_v5  ;;  %2384 = vmatprep.mubr.bf16.mxu1 %v1236_v7  ;;  %v1031_v61 = vadd.f32 %v1030_v0, %v746_v57  ;;  %v753_v8 = vcvt.s32.f32 %v497_v48  ;;  %v2724_v3 = vadd.f32 %v2723_v24, %v2722_v42  ;;  %v2836_v45 = vadd.f32 %v2835_v4, %v2834_v59 }
 0x169   : > { %2223 = vmatprep.mubr.bf16.mxu0 %v1234_v54  ;;  %v1037_v18 = vadd.f32 %v1036_v33, %v751_v55  ;;  %v1233_v9 = vunpack.c.h.s8.bf16 %v4203_v39  ;;  %v1235_v47 = vunpack.c.h.s8.bf16 %v4223_v62  ;;  %v3329_v54 = vld [vmem:[%s3599_s24 + $0x1f8] sm:$0xff]  ;;  %v754_v49 = vcvt.s32.f32 %v498_v12  ;;  %v2726_v60 = vpop.f32.mrf.mxu0  ;;  %v2838_v46 = vpop.f32.mrf.mxu1 }
 0x16a   : > { %v1032_v6 = vadd.f32 %v1031_v61, %v747_v50  ;;  %v500_v23 = vunpack.c.3.s8 %v3329_v54  ;;  %v4481_v44 = vadd.f32 %v2836_v45, %v2724_v3  ;;  %v755_v11 = vcvt.s32.f32 %v499_v53 }
 0x16b   : > { %v1038_v15 = vadd.f32 %v1037_v18, %v752_v14  ;;  %v2727_v20 = vadd.f32 %v2726_v60, %v2725_v21  ;;  %v2839_v1 = vadd.f32 %v2838_v46, %v2837_v51  ;;  %v2728_v39 = vpop.f32.mrf.mxu0  ;;  %v2840_v7 = vpop.f32.mrf.mxu1 }
 0x16c   : > { %v1033_v27 = vadd.f32 %v1032_v6, %v748_v31  ;;  %v756_v43 = vcvt.s32.f32 %v500_v23 }
 0x16d   : > { %v1039_v16 = vadd.f32 %v1038_v15, %v753_v8  ;;  %v4483_v37 = vadd.f32 %v2839_v1, %v2727_v20  ;;  %v2729_v22 = vpop.f32.mrf.mxu0  ;;  %v2841_v57 = vpop.f32.mrf.mxu1 }
 0x16e   : > { %1034 = vadd.xlane.f32.xlu0 %v1033_v27  ;;  %v2730_v25 = vadd.f32 %v2729_v22, %v2728_v39  ;;  %v2842_v63 = vadd.f32 %v2841_v57, %v2840_v7 }
 0x16f   : > { %2385 = vmatmul.mubr.bf16.gmra.mxu1 %v1235_v47  ;;  %v1040_v62 = vadd.f32 %v1039_v16, %v754_v49  ;;  %v2731_v41 = vpop.f32.mrf.mxu0  ;;  %v2843_v40 = vpop.f32.mrf.mxu1 }
 0x170   : > { %2224 = vmatmul.mubr.bf16.gmra.mxu0 %v1233_v9  ;;  %v4485_v36 = vadd.f32 %v2842_v63, %v2730_v25 }
 0x171   : > { %v1041_v29 = vadd.f32 %v1040_v62, %v755_v11  ;;  %v2732_v55 = vpop.f32.mrf.mxu0  ;;  %v2844_v58 = vpop.f32.mrf.mxu1 }
 0x172   : > { %v2733_v56 = vadd.f32 %v2732_v55, %v2731_v41  ;;  %v2845_v50 = vadd.f32 %v2844_v58, %v2843_v40 }
 0x173   : > { %v1042_v48 = vadd.f32 %v1041_v29, %v756_v43  ;;  %v2734_v0 = vpop.f32.mrf.mxu0  ;;  %v2846_v42 = vpop.f32.mrf.mxu1 }
 0x174   : > { %v4487_v59 = vadd.f32 %v2845_v50, %v2733_v56 }
 0x175   : > { %1043 = vadd.xlane.f32.xlu1 %v1042_v48  ;;  %v2735_v5 = vpop.f32.mrf.mxu0  ;;  %v2847_v10 = vpop.f32.mrf.mxu1 }
 0x176   : > { %v2736_v12 = vadd.f32 %v2735_v5, %v2734_v0  ;;  %v2848_v14 = vadd.f32 %v2847_v10, %v2846_v42 }
 0x177   : > { %v2737_v33 = vpop.f32.mrf.mxu0  ;;  %v2849_v31 = vpop.f32.mrf.mxu1 }
 0x178   : > { %v4489_v61 = vadd.f32 %v2848_v14, %v2736_v12 }
 0x179   : > { %v2738_v24 = vpop.f32.mrf.mxu0  ;;  %v2850_v4 = vpop.f32.mrf.mxu1 }
 0x17a   : > { %v2739_v53 = vadd.f32 %v2738_v24, %v2737_v33  ;;  %v2851_v8 = vadd.f32 %v2850_v4, %v2849_v31 }
 0x17b   : > { %v2740_v18 = vpop.f32.mrf.mxu0  ;;  %v2852_v3 = vpop.f32.mrf.mxu1 }
 0x17c   : > { %v4491_v45 = vadd.f32 %v2851_v8, %v2739_v53 }
 0x17d   : > { %v2741_v9 = vpop.f32.mrf.mxu0  ;;  %v2853_v6 = vpop.f32.mrf.mxu1 }
 0x17e   : > { %v2742_v21 = vadd.f32 %v2741_v9, %v2740_v18  ;;  %v2854_v51 = vadd.f32 %v2853_v6, %v2852_v3 }
 0x17f   : > { %v2743_v47 = vpop.f32.mrf.mxu0  ;;  %v2855_v54 = vpop.f32.mrf.mxu1 }
 0x180   : > { %v4493_v23 = vadd.f32 %v2854_v51, %v2742_v21 }
 0x181   : > { %v2744_v49 = vpop.f32.mrf.mxu0  ;;  %v2856_v15 = vpop.f32.mrf.mxu1 }
 0x182   : > { %v2745_v27 = vadd.f32 %v2744_v49, %v2743_v47  ;;  %v2857_v60 = vadd.f32 %v2856_v15, %v2855_v54 }
 0x183   : > { %v2746_v46 = vpop.f32.mrf.mxu0  ;;  %v2858_v11 = vpop.f32.mrf.mxu1 }
 0x184   : > { %v4495_v16 = vadd.f32 %v2857_v60, %v2745_v27 }
 0x185   : > { %v2747_v20 = vpop.f32.mrf.mxu0  ;;  %v2859_v1 = vpop.f32.mrf.mxu1 }
 0x186   : > { %v2748_v39 = vadd.f32 %v2747_v20, %v2746_v46  ;;  %v2860_v7 = vadd.f32 %v2859_v1, %v2858_v11 }
 0x187   : > { %v2749_v43 = vpop.f32.mrf.mxu0  ;;  %v2861_v62 = vpop.f32.mrf.mxu1 }
 0x188   : > { %v4497_v22 = vadd.f32 %v2860_v7, %v2748_v39 }
 0x189   : > { %v2750_v57 = vpop.f32.mrf.mxu0  ;;  %v2862_v29 = vpop.f32.mrf.mxu1 }
 0x18a   : > { %v2751_v25 = vadd.f32 %v2750_v57, %v2749_v43  ;;  %v2863_v63 = vadd.f32 %v2862_v29, %v2861_v62 }
 0x18b   : > { %v2752_v41 = vpop.f32.mrf.mxu0  ;;  %v2864_v40 = vpop.f32.mrf.mxu1 }
 0x18c   : > { %v4499_v48 = vadd.f32 %v2863_v63, %v2751_v25  ;;  %v765_v63 = vpop.xlane.xlu0 %764 }
 0x18d   : > { %v2753_v55 = vpop.f32.mrf.mxu0  ;;  %v2865_v58 = vpop.f32.mrf.mxu1 }
 0x18e   : > { %v2754_v56 = vadd.f32 %v2753_v55, %v2752_v41  ;;  %v2866_v50 = vadd.f32 %v2865_v58, %v2864_v40 }
 0x18f   : > { %v2755_v0 = vpop.f32.mrf.mxu0  ;;  %v2867_v42 = vpop.f32.mrf.mxu1 }
 0x190   : > { %v4501_v5 = vadd.f32 %v2866_v50, %v2754_v56 }
 0x191   : > { %v2756_v10 = vpop.f32.mrf.mxu0  ;;  %v2868_v12 = vpop.f32.mrf.mxu1 }
 0x192   : > { %v2757_v14 = vadd.f32 %v2756_v10, %v2755_v0  ;;  %v2869_v33 = vadd.f32 %v2868_v12, %v2867_v42 }
 0x193   : > { %v2758_v31 = vpop.f32.mrf.mxu0  ;;  %v2870_v24 = vpop.f32.mrf.mxu1 }
 0x194   : > { %v4503_v4 = vadd.f32 %v2869_v33, %v2757_v14  ;;  %v1045_v14 = vmax.f32 %v765_v63, 1.0  ;;  %v774_v33 = vpop.xlane.xlu0 %773 }
 0x195   : > { %v2759_v53 = vpop.f32.mrf.mxu0  ;;  %v2871_v8 = vpop.f32.mrf.mxu1 }
 0x196   : > { %v2760_v18 = vadd.f32 %v2759_v53, %v2758_v31  ;;  %v2872_v3 = vadd.f32 %v2871_v8, %v2870_v24  ;;  %3244 = vrsqrt.f32 %v1045_v14 }
 0x197   : > { %v2761_v9 = vpop.f32.mrf.mxu0  ;;  %v2873_v6 = vpop.f32.mrf.mxu1 }
 0x198   : > { %v4505_v21 = vadd.f32 %v2872_v3, %v2760_v18  ;;  %v783_v18 = vpop.xlane.xlu1 %782 }
 0x199   : > { %v2762_v51 = vpop.f32.mrf.mxu0  ;;  %v2874_v47 = vpop.f32.mrf.mxu1 }
 0x19a   : > { %v2763_v54 = vadd.f32 %v2762_v51, %v2761_v9  ;;  %v2875_v49 = vadd.f32 %v2874_v47, %v2873_v6  ;;  %v1046_v51 = vmax.f32 %v774_v33, 1.0 }
 0x19b   : > { %v2764_v15 = vpop.f32.mrf.mxu0  ;;  %v2876_v27 = vpop.f32.mrf.mxu1 }
 0x19c   : > { %v4507_v60 = vadd.f32 %v2875_v49, %v2763_v54  ;;  %3246 = vrsqrt.f32 %v1046_v51 }
 0x19d   : > { %v2765_v46 = vpop.f32.mrf.mxu0  ;;  %v2877_v11 = vpop.f32.mrf.mxu1 }
 0x19e   : > { %v2766_v20 = vadd.f32 %v2765_v46, %v2764_v15  ;;  %v2878_v1 = vadd.f32 %v2877_v11, %v2876_v27 }
 0x19f   : > { %v2767_v39 = vpop.f32.mrf.mxu0  ;;  %v2879_v7 = vpop.f32.mrf.mxu1 }
 0x1a0   : > { %v4509_v43 = vadd.f32 %v2878_v1, %v2766_v20  ;;  %v1047_v20 = vmax.f32 %v783_v18, 1.0  ;;  %v792_v1 = vpop.xlane.xlu1 %791 }
 0x1a1   : > { %v2768_v62 = vpop.f32.mrf.mxu0  ;;  %v2880_v57 = vpop.f32.mrf.mxu1 }
 0x1a2   : > { %v2769_v29 = vadd.f32 %v2768_v62, %v2767_v39  ;;  %v2881_v25 = vadd.f32 %v2880_v57, %v2879_v7  ;;  %3248 = vrsqrt.f32 %v1047_v20 }
 0x1a3   : > { %v2770_v41 = vpop.f32.mrf.mxu0  ;;  %v2882_v40 = vpop.f32.mrf.mxu1 }
 0x1a4   : > { %v4511_v55 = vadd.f32 %v2881_v25, %v2769_v29 }
 0x1a5   : > { %v2771_v58 = vpop.f32.mrf.mxu0  ;;  %v2883_v56 = vpop.f32.mrf.mxu1 }
 0x1a6   : > { %v2772_v50 = vadd.f32 %v2771_v58, %v2770_v41  ;;  %v2884_v0 = vadd.f32 %v2883_v56, %v2882_v40  ;;  %v1048_v41 = vmax.f32 %v792_v1, 1.0  ;;  %v801_v40 = vpop.xlane.xlu0 %800 }
 0x1a7   : > { %v2773_v42 = vpop.f32.mrf.mxu0  ;;  %v2885_v10 = vpop.f32.mrf.mxu1  ;;  %v1049_v33 = vmax.f32 %v801_v40, 1.0 }
 0x1a8   : > { %v4513_v12 = vadd.f32 %v2884_v0, %v2772_v50  ;;  %3250 = vrsqrt.f32 %v1048_v41 }
 0x1a9   : > { %v2774_v31 = vpop.f32.mrf.mxu0  ;;  %v2886_v24 = vpop.f32.mrf.mxu1  ;;  %3252 = vrsqrt.f32 %v1049_v33 }
 0x1aa   : > { %v2775_v53 = vadd.f32 %v2774_v31, %v2773_v42  ;;  %v2887_v8 = vadd.f32 %v2886_v24, %v2885_v10  ;;  %v810_v31 = vpop.xlane.xlu1 %809  ;;  %v3245_v24 = vpop.eup %3244 }
 0x1ab   : > { %v2776_v3 = vpop.f32.mrf.mxu0  ;;  %v2888_v9 = vpop.f32.mrf.mxu1 }
 0x1ac   : > { %v4515_v6 = vadd.f32 %v2887_v8, %v2775_v53 }
 0x1ad   : > { %v2777_v47 = vpop.f32.mrf.mxu0  ;;  %v2889_v54 = vpop.f32.mrf.mxu1 }
 0x1ae   : > { %v2778_v49 = vadd.f32 %v2777_v47, %v2776_v3  ;;  %v2890_v15 = vadd.f32 %v2889_v54, %v2888_v9  ;;  %v1050_v47 = vmax.f32 %v810_v31, 1.0  ;;  %v828_v40 = vpop.xlane.xlu1 %827 }
 0x1af   : > { %v2779_v27 = vpop.f32.mrf.mxu0  ;;  %v2891_v46 = vpop.f32.mrf.mxu1  ;;  %v1052_v31 = vmax.f32 %v828_v40, 1.0 }
 0x1b0   : > { %v4517_v11 = vadd.f32 %v2890_v15, %v2778_v49  ;;  %3254 = vrsqrt.f32 %v1050_v47 }
 0x1b1   : > { %v2780_v39 = vpop.f32.mrf.mxu0  ;;  %v2892_v7 = vpop.f32.mrf.mxu1 }
 0x1b2   : > { %v2781_v62 = vadd.f32 %v2780_v39, %v2779_v27  ;;  %v2893_v57 = vadd.f32 %v2892_v7, %v2891_v46  ;;  %v819_v27 = vpop.xlane.xlu0 %818 }
 0x1b3   : > { %v2910_v29 = vpop.f32.mrf.mxu0  ;;  %v3022_v25 = vpop.f32.mrf.mxu1 }
 0x1b4   : > { %v4519_v63 = vadd.f32 %v2893_v57, %v2781_v62 }
 0x1b5   : > { %v2911_v58 = vpop.f32.mrf.mxu0  ;;  %v3023_v56 = vpop.f32.mrf.mxu1 }
 0x1b6   : > { %v2912_v50 = vadd.f32 %v2911_v58, %v2910_v29  ;;  %v3024_v14 = vadd.f32 %v3023_v56, %v3022_v25  ;;  %v1051_v29 = vmax.f32 %v819_v27, 1.0 }
 0x1b7   : > { %v2913_v0 = vpop.f32.mrf.mxu0  ;;  %v3025_v42 = vpop.f32.mrf.mxu1 }
 0x1b8   : > { %v2106_v10 = vadd.f32 %v2912_v50, %v4346_v26  ;;  %v3247_v26 = vpop.eup %3246  ;;  %3256 = vrsqrt.f32 %v1051_v29 }
 0x1b9   : > { %v2914_v53 = vpop.f32.mrf.mxu0  ;;  %v3026_v8 = vpop.f32.mrf.mxu1  ;;  %3258 = vrsqrt.f32 %v1052_v31 }
 0x1ba   : > { %v2267_v18 = vadd.f32 %v3024_v14, %v2106_v10  ;;  %v2915_v3 = vadd.f32 %v2914_v53, %v2913_v0  ;;  %v3027_v15 = vadd.f32 %v3026_v8, %v3025_v42  ;;  %v3249_v58 = vpop.eup %3248 }
 0x1bb   : > { %v2916_v9 = vpop.f32.mrf.mxu0  ;;  %v3028_v51 = vpop.f32.mrf.mxu1 }
 0x1bc   : > { %v2393_v54 = vmul.f32 %v3245_v24, %v2267_v18  ;;  %v2109_v49 = vadd.f32 %v2915_v3, %v4357_v32  ;;  %v3251_v18 = vpop.eup %3250 }
 0x1bd   : > { %v2917_v46 = vpop.f32.mrf.mxu0  ;;  %v3029_v20 = vpop.f32.mrf.mxu1 }
 0x1be   : > { %v2425_v1 = vmax.f32 %v2393_v54, 0.0  ;;  %v2270_v39 = vadd.f32 %v3027_v15, %v2109_v49  ;;  %v2918_v7 = vadd.f32 %v2917_v46, %v2916_v9  ;;  %v3030_v41 = vadd.f32 %v3029_v20, %v3028_v51 }
 0x1bf   : > { %v2919_v62 = vpop.f32.mrf.mxu0  ;;  %v3031_v57 = vpop.f32.mrf.mxu1 }
 0x1c0   : > { %2457 = vst [vmem:[%s4524_s17] sm:$0xff] %v2425_v1  ;;  %v2394_v25 = vmul.f32 %v3247_v26, %v2270_v39  ;;  %v2114_v32 = vadd.f32 %v2918_v7, %v4367_v52  ;;  %v837_v52 = vpop.xlane.xlu0 %836  ;;  %v3253_v1 = vpop.eup %3252 }
 0x1c1   : > { %v2920_v56 = vpop.f32.mrf.mxu0  ;;  %v3032_v50 = vpop.f32.mrf.mxu1  ;;  %v1053_v27 = vmax.f32 %v837_v52, 1.0 }
 0x1c2   : > { %v2426_v0 = vmax.f32 %v2394_v25, 0.0  ;;  %v2275_v42 = vadd.f32 %v3030_v41, %v2114_v32  ;;  %v2921_v10 = vadd.f32 %v2920_v56, %v2919_v62  ;;  %v3033_v8 = vadd.f32 %v3032_v50, %v3031_v57  ;;  %v3255_v50 = vpop.eup %3254 }
 0x1c3   : > { %v2922_v14 = vpop.f32.mrf.mxu0  ;;  %v3034_v33 = vpop.f32.mrf.mxu1  ;;  %3260 = vrsqrt.f32 %v1053_v27 }
 0x1c4   : > { %2458 = vst [vmem:[%s4524_s17 + $0x8] sm:$0xff] %v2426_v0  ;;  %v2395_v24 = vmul.f32 %v3249_v58, %v2275_v42  ;;  %v2117_v53 = vadd.f32 %v2921_v10, %v4378_v35  ;;  %v846_v35 = vpop.xlane.xlu1 %845 }
 0x1c5   : > { %v2923_v3 = vpop.f32.mrf.mxu0  ;;  %v3035_v9 = vpop.f32.mrf.mxu1  ;;  %v1054_v56 = vmax.f32 %v846_v35, 1.0 }
 0x1c6   : > { %v2427_v51 = vmax.f32 %v2395_v24, 0.0  ;;  %v2278_v47 = vadd.f32 %v3033_v8, %v2117_v53  ;;  %v2924_v54 = vadd.f32 %v2923_v3, %v2922_v14  ;;  %v3036_v20 = vadd.f32 %v3035_v9, %v3034_v33  ;;  %v3257_v3 = vpop.eup %3256 }
 0x1c7   : > { %v2925_v49 = vpop.f32.mrf.mxu0  ;;  %v3037_v15 = vpop.f32.mrf.mxu1  ;;  %3262 = vrsqrt.f32 %v1054_v56 }
 0x1c8   : > { %2459 = vst [vmem:[%s4524_s17 + $0x10] sm:$0xff] %v2427_v51  ;;  %v2396_v26 = vmul.f32 %v3251_v18, %v2278_v47  ;;  %v2122_v46 = vadd.f32 %v2924_v54, %v4391_v28  ;;  %v855_v28 = vpop.xlane.xlu0 %854 }
 0x1c9   : > { %v2926_v39 = vpop.f32.mrf.mxu0  ;;  %v3038_v7 = vpop.f32.mrf.mxu1  ;;  %v1055_v53 = vmax.f32 %v855_v28, 1.0 }
 0x1ca   : > { %v2428_v62 = vmax.f32 %v2396_v26, 0.0  ;;  %v2283_v57 = vadd.f32 %v3036_v20, %v2122_v46  ;;  %v2927_v29 = vadd.f32 %v2926_v39, %v2925_v49  ;;  %v3039_v58 = vadd.f32 %v3038_v7, %v3037_v15 }
 0x1cb   : > { %v2928_v25 = vpop.f32.mrf.mxu0  ;;  %v3040_v32 = vpop.f32.mrf.mxu1  ;;  %3264 = vrsqrt.f32 %v1055_v53 }
 0x1cc   : > { %2460 = vst [vmem:[%s4524_s17 + $0x18] sm:$0xff] %v2428_v62  ;;  %v2397_v41 = vmul.f32 %v3253_v1, %v2283_v57  ;;  %v2125_v40 = vadd.f32 %v2927_v29, %v4410_v30  ;;  %v864_v30 = vpop.xlane.xlu1 %863  ;;  %v3259_v1 = vpop.eup %3258 }
 0x1cd   : > { %v2929_v0 = vpop.f32.mrf.mxu0  ;;  %v3041_v42 = vpop.f32.mrf.mxu1  ;;  %v1056_v35 = vmax.f32 %v864_v30, 1.0 }
 0x1ce   : > { %v2429_v10 = vmax.f32 %v2397_v41, 0.0  ;;  %v2286_v14 = vadd.f32 %v3039_v58, %v2125_v40  ;;  %v2930_v33 = vadd.f32 %v2929_v0, %v2928_v25  ;;  %v3042_v18 = vadd.f32 %v3041_v42, %v3040_v32 }
 0x1cf   : > { %v2931_v31 = vpop.f32.mrf.mxu0  ;;  %v3043_v24 = vpop.f32.mrf.mxu1  ;;  %3266 = vrsqrt.f32 %v1056_v35 }
 0x1d0   : > { %2461 = vst [vmem:[%s4524_s17 + $0x20] sm:$0xff] %v2429_v10  ;;  %v2398_v8 = vmul.f32 %v3255_v50, %v2286_v14  ;;  %v2130_v52 = vadd.f32 %v2930_v33, %v4422_v34  ;;  %v873_v34 = vpop.xlane.xlu0 %872  ;;  %v3261_v40 = vpop.eup %3260 }
 0x1d1   : > { %v2932_v9 = vpop.f32.mrf.mxu0  ;;  %v3044_v51 = vpop.f32.mrf.mxu1  ;;  %v1057_v41 = vmax.f32 %v873_v34, 1.0 }
 0x1d2   : > { %v2430_v47 = vmax.f32 %v2398_v8, 0.0  ;;  %v2291_v54 = vadd.f32 %v3042_v18, %v2130_v52  ;;  %v2933_v49 = vadd.f32 %v2932_v9, %v2931_v31  ;;  %v3045_v20 = vadd.f32 %v3044_v51, %v3043_v24 }
 0x1d3   : > { %v2934_v15 = vpop.f32.mrf.mxu0  ;;  %v3046_v27 = vpop.f32.mrf.mxu1  ;;  %3268 = vrsqrt.f32 %v1057_v41 }
 0x1d4   : > { %2462 = vst [vmem:[%s4524_s17 + $0x28] sm:$0xff] %v2430_v47  ;;  %v2399_v26 = vmul.f32 %v3257_v3, %v2291_v54  ;;  %v2133_v46 = vadd.f32 %v2933_v49, %v4431_v13  ;;  %v882_v13 = vpop.xlane.xlu1 %881  ;;  %v891_v18 = vpop.xlane.xlu0 %890 }
 0x1d5   : > { %v2935_v39 = vpop.f32.mrf.mxu0  ;;  %v3047_v7 = vpop.f32.mrf.mxu1  ;;  %v1058_v52 = vmax.f32 %v882_v13, 1.0 }
 0x1d6   : > { %v2431_v62 = vmax.f32 %v2399_v26, 0.0  ;;  %v2294_v57 = vadd.f32 %v3045_v20, %v2133_v46  ;;  %v2936_v29 = vadd.f32 %v2935_v39, %v2934_v15  ;;  %v3048_v28 = vadd.f32 %v3047_v7, %v3046_v27 }
 0x1d7   : > { %v2937_v25 = vpop.f32.mrf.mxu0  ;;  %v3049_v32 = vpop.f32.mrf.mxu1  ;;  %v1059_v15 = vmax.f32 %v891_v18, 1.0  ;;  %3270 = vrsqrt.f32 %v1058_v52 }
 0x1d8   : > { %2463 = vst [vmem:[%s4524_s17 + $0x30] sm:$0xff] %v2431_v62  ;;  %v2400_v58 = vmul.f32 %v3259_v1, %v2294_v57  ;;  %v2138_v56 = vadd.f32 %v2936_v29, %v4443_v2  ;;  %v3263_v2 = vpop.eup %3262 }
 0x1d9   : > { %v2938_v50 = vpop.f32.mrf.mxu0  ;;  %v3050_v0 = vpop.f32.mrf.mxu1  ;;  %3272 = vrsqrt.f32 %v1059_v15 }
 0x1da   : > { %v2432_v42 = vmax.f32 %v2400_v58, 0.0  ;;  %v2299_v10 = vadd.f32 %v3048_v28, %v2138_v56  ;;  %v2939_v14 = vadd.f32 %v2938_v50, %v2937_v25  ;;  %v3051_v8 = vadd.f32 %v3050_v0, %v3049_v32  ;;  %v3265_v27 = vpop.eup %3264 }
 0x1db   : > { %v2940_v33 = vpop.f32.mrf.mxu0  ;;  %v3052_v31 = vpop.f32.mrf.mxu1 }
 0x1dc   : > { %2464 = vst [vmem:[%s4524_s17 + $0x38] sm:$0xff] %v2432_v42  ;;  %v2401_v24 = vmul.f32 %v3261_v40, %v2299_v10  ;;  %v2141_v53 = vadd.f32 %v2939_v14, %v4452_v38  ;;  %v900_v38 = vpop.xlane.xlu1 %899  ;;  %v909_v40 = vpop.xlane.xlu0 %908 }
 0x1dd   : > { %v2941_v30 = vpop.f32.mrf.mxu0  ;;  %v3053_v3 = vpop.f32.mrf.mxu1  ;;  %v1060_v41 = vmax.f32 %v900_v38, 1.0  ;;  %v1061_v10 = vmax.f32 %v909_v40, 1.0 }
 0x1de   : > { %v2433_v9 = vmax.f32 %v2401_v24, 0.0  ;;  %v2302_v51 = vadd.f32 %v3051_v8, %v2141_v53  ;;  %v2942_v47 = vadd.f32 %v2941_v30, %v2940_v33  ;;  %v3054_v20 = vadd.f32 %v3053_v3, %v3052_v31 }
 0x1df   : > { %v2943_v54 = vpop.f32.mrf.mxu0  ;;  %v3055_v49 = vpop.f32.mrf.mxu1  ;;  %3274 = vrsqrt.f32 %v1060_v41 }
 0x1e0   : > { %2465 = vst [vmem:[%s4524_s17 + $0x40] sm:$0xff] %v2433_v9  ;;  %v2402_v26 = vmul.f32 %v3263_v2, %v2302_v51  ;;  %v2146_v46 = vadd.f32 %v2942_v47, %v4465_v17  ;;  %v3267_v17 = vpop.eup %3266  ;;  %3276 = vrsqrt.f32 %v1061_v10 }
 0x1e1   : > { %v2944_v35 = vpop.f32.mrf.mxu0  ;;  %v3056_v34 = vpop.f32.mrf.mxu1 }
 0x1e2   : > { %v2434_v1 = vmax.f32 %v2402_v26, 0.0  ;;  %v2307_v39 = vadd.f32 %v3054_v20, %v2146_v46  ;;  %v2945_v7 = vadd.f32 %v2944_v35, %v2943_v54  ;;  %v3057_v32 = vadd.f32 %v3056_v34, %v3055_v49  ;;  %v3269_v14 = vpop.eup %3268  ;;  %v927_v49 = vpop.xlane.xlu0 %926 }
 0x1e3   : > { %v2946_v62 = vpop.f32.mrf.mxu0  ;;  %v3058_v57 = vpop.f32.mrf.mxu1  ;;  %v1063_v34 = vmax.f32 %v927_v49, 1.0 }
 0x1e4   : > { %2466 = vst [vmem:[%s4524_s17 + $0x48] sm:$0xff] %v2434_v1  ;;  %v2403_v29 = vmul.f32 %v3265_v27, %v2307_v39  ;;  %v2149_v25 = vadd.f32 %v2945_v7, %v4473_v19  ;;  %v918_v19 = vpop.xlane.xlu1 %917 }
 0x1e5   : > { %v2947_v58 = vpop.f32.mrf.mxu0  ;;  %v3059_v56 = vpop.f32.mrf.mxu1  ;;  %v1062_v54 = vmax.f32 %v918_v19, 1.0 }
 0x1e6   : > { %v2435_v28 = vmax.f32 %v2403_v29, 0.0  ;;  %v2310_v13 = vadd.f32 %v3057_v32, %v2149_v25  ;;  %v2948_v50 = vadd.f32 %v2947_v58, %v2946_v62  ;;  %v3060_v24 = vadd.f32 %v3059_v56, %v3058_v57 }
 0x1e7   : > { %v2949_v0 = vpop.f32.mrf.mxu0  ;;  %v3061_v42 = vpop.f32.mrf.mxu1  ;;  %3278 = vrsqrt.f32 %v1062_v54 }
 0x1e8   : > { %2467 = vst [vmem:[%s4524_s17 + $0x50] sm:$0xff] %v2435_v28  ;;  %v2404_v33 = vmul.f32 %v3267_v17, %v2310_v13  ;;  %v2154_v31 = vadd.f32 %v2948_v50, %v4481_v44  ;;  %v3271_v44 = vpop.eup %3270  ;;  %3280 = vrsqrt.f32 %v1063_v34  ;;  %v945_v50 = vpop.xlane.xlu0 %944 }
 0x1e9   : > { %v2950_v53 = vpop.f32.mrf.mxu0  ;;  %v3062_v8 = vpop.f32.mrf.mxu1  ;;  %v1065_v19 = vmax.f32 %v945_v50, 1.0 }
 0x1ea   : > { %v2436_v52 = vmax.f32 %v2404_v33, 0.0  ;;  %v2315_v18 = vadd.f32 %v3060_v24, %v2154_v31  ;;  %v2951_v2 = vadd.f32 %v2950_v53, %v2949_v0  ;;  %v3063_v47 = vadd.f32 %v3062_v8, %v3061_v42  ;;  %v3273_v1 = vpop.eup %3272 }
 0x1eb   : > { %v2952_v30 = vpop.f32.mrf.mxu0  ;;  %v3064_v3 = vpop.f32.mrf.mxu1 }
 0x1ec   : > { %2468 = vst [vmem:[%s4524_s17 + $0x58] sm:$0xff] %v2436_v52  ;;  %v2405_v9 = vmul.f32 %v3269_v14, %v2315_v18  ;;  %v2157_v51 = vadd.f32 %v2951_v2, %v4483_v37  ;;  %v936_v37 = vpop.xlane.xlu1 %935 }
 0x1ed   : > { %v2953_v15 = vpop.f32.mrf.mxu0  ;;  %v3065_v27 = vpop.f32.mrf.mxu1  ;;  %v1064_v13 = vmax.f32 %v936_v37, 1.0 }
 0x1ee   : > { %v2437_v26 = vmax.f32 %v2405_v9, 0.0  ;;  %v2318_v46 = vadd.f32 %v3063_v47, %v2157_v51  ;;  %v2954_v20 = vadd.f32 %v2953_v15, %v2952_v30  ;;  %v3066_v62 = vadd.f32 %v3065_v27, %v3064_v3 }
 0x1ef   : > { %v2955_v38 = vpop.f32.mrf.mxu0  ;;  %v3067_v35 = vpop.f32.mrf.mxu1  ;;  %3282 = vrsqrt.f32 %v1064_v13 }
 0x1f0   : > { %2469 = vst [vmem:[%s4524_s17 + $0x60] sm:$0xff] %v2437_v26  ;;  %v2406_v39 = vmul.f32 %v3271_v44, %v2318_v46  ;;  %v2162_v7 = vadd.f32 %v2954_v20, %v4485_v36  ;;  %v3275_v36 = vpop.eup %3274  ;;  %3284 = vrsqrt.f32 %v1065_v19  ;;  %v963_v26 = vpop.xlane.xlu0 %962 }
 0x1f1   : > { %v2956_v57 = vpop.f32.mrf.mxu0  ;;  %v3068_v29 = vpop.f32.mrf.mxu1 }
 0x1f2   : > { %v2438_v25 = vmax.f32 %v2406_v39, 0.0  ;;  %v2323_v32 = vadd.f32 %v3066_v62, %v2162_v7  ;;  %v2957_v41 = vadd.f32 %v2956_v57, %v2955_v38  ;;  %v3069_v28 = vadd.f32 %v3068_v29, %v3067_v35  ;;  %v3277_v53 = vpop.eup %3276 }
 0x1f3   : > { %v2958_v40 = vpop.f32.mrf.mxu0  ;;  %v3070_v17 = vpop.f32.mrf.mxu1  ;;  %v1067_v7 = vmax.f32 %v963_v26, 1.0 }
 0x1f4   : > { %2470 = vst [vmem:[%s4524_s17 + $0x68] sm:$0xff] %v2438_v25  ;;  %v2407_v58 = vmul.f32 %v3273_v1, %v2323_v32  ;;  %v2165_v56 = vadd.f32 %v2957_v41, %v4487_v59  ;;  %v954_v59 = vpop.xlane.xlu1 %953 }
 0x1f5   : > { %v2959_v0 = vpop.f32.mrf.mxu0  ;;  %v3071_v42 = vpop.f32.mrf.mxu1  ;;  %v1066_v27 = vmax.f32 %v954_v59, 1.0 }
 0x1f6   : > { %v2439_v10 = vmax.f32 %v2407_v58, 0.0  ;;  %v2326_v14 = vadd.f32 %v3069_v28, %v2165_v56  ;;  %v2960_v33 = vadd.f32 %v2959_v0, %v2958_v40  ;;  %v3072_v18 = vadd.f32 %v3071_v42, %v3070_v17  ;;  %v981_v0 = vpop.xlane.xlu0 %980 }
 0x1f7   : > { %v2961_v31 = vpop.f32.mrf.mxu0  ;;  %v3073_v24 = vpop.f32.mrf.mxu1  ;;  %3286 = vrsqrt.f32 %v1066_v27 }
 0x1f8   : > { %2471 = vst [vmem:[%s4524_s17 + $0x70] sm:$0xff] %v2439_v10  ;;  %v2408_v8 = vmul.f32 %v3275_v36, %v2326_v14  ;;  %v2170_v52 = vadd.f32 %v2960_v33, %v4489_v61  ;;  %v3279_v61 = vpop.eup %3278  ;;  %3288 = vrsqrt.f32 %v1067_v7 }
 0x1f9   : > { %v2962_v2 = vpop.f32.mrf.mxu0  ;;  %v3074_v30 = vpop.f32.mrf.mxu1 }
 0x1fa   : > { %v2440_v3 = vmax.f32 %v2408_v8, 0.0  ;;  %v2331_v9 = vadd.f32 %v3072_v18, %v2170_v52  ;;  %v2963_v51 = vadd.f32 %v2962_v2, %v2961_v31  ;;  %v3075_v15 = vadd.f32 %v3074_v30, %v3073_v24  ;;  %v3281_v62 = vpop.eup %3280  ;;  %v999_v26 = vpop.xlane.xlu0 %998 }
 0x1fc   : > { %v2964_v47 = vpop.f32.mrf.mxu0  ;;  %v3076_v54 = vpop.f32.mrf.mxu1  ;;  %2472 = vst [vmem:[%s4524_s17 + $0x78] sm:$0xff] %v2440_v3  ;;  %v2409_v49 = vmul.f32 %v3277_v53, %v2331_v9  ;;  %v2173_v44 = vadd.f32 %v2963_v51, %v4491_v45  ;;  %v1069_v53 = vmax.f32 %v981_v0, 1.0 }
 0x1fd   : > { %v972_v45 = vpop.xlane.xlu1 %971 }
 0x1fe   : > { %v2965_v46 = vpop.f32.mrf.mxu0  ;;  %v3077_v20 = vpop.f32.mrf.mxu1  ;;  %v2441_v38 = vmax.f32 %v2409_v49, 0.0  ;;  %v2334_v35 = vadd.f32 %v3075_v15, %v2173_v44  ;;  %v1068_v36 = vmax.f32 %v972_v45, 1.0 }
 0x1ff   : > { %v2966_v34 = vadd.f32 %v2965_v46, %v2964_v47  ;;  %v3078_v29 = vadd.f32 %v3077_v20, %v3076_v54 }
 0x200   : > { %v2967_v1 = vpop.f32.mrf.mxu0  ;;  %v3079_v39 = vpop.f32.mrf.mxu1  ;;  %2473 = vst [vmem:[%s4524_s17 + $0x80] sm:$0xff] %v2441_v38  ;;  %v2410_v37 = vmul.f32 %v3279_v61, %v2334_v35  ;;  %3290 = vrsqrt.f32 %v1068_v36 }
 0x201   : > { %v2178_v57 = vadd.f32 %v2966_v34, %v4493_v23  ;;  %v3283_v23 = vpop.eup %3282  ;;  %3292 = vrsqrt.f32 %v1069_v53 }
 0x202   : > { %v2968_v25 = vpop.f32.mrf.mxu0  ;;  %v3080_v32 = vpop.f32.mrf.mxu1  ;;  %v2442_v41 = vmax.f32 %v2410_v37, 0.0 }
 0x203   : > { %v2339_v40 = vadd.f32 %v3078_v29, %v2178_v57  ;;  %v2969_v17 = vadd.f32 %v2968_v25, %v2967_v1  ;;  %v3081_v50 = vadd.f32 %v3080_v32, %v3079_v39  ;;  %v3285_v8 = vpop.eup %3284  ;;  %v1071_v39 = vmax.f32 %v999_v26, 1.0 }
 0x204   : > { %2474 = vst [vmem:[%s4524_s17 + $0x88] sm:$0xff] %v2442_v41 }
 0x205   : > { %v2970_v58 = vpop.f32.mrf.mxu0  ;;  %v3082_v56 = vpop.f32.mrf.mxu1  ;;  %v2411_v28 = vmul.f32 %v3281_v62, %v2339_v40  ;;  %v2181_v13 = vadd.f32 %v2969_v17, %v4495_v16 }
 0x206   : > { %v990_v16 = vpop.xlane.xlu1 %989 }
 0x207   : > { %v2971_v42 = vpop.f32.mrf.mxu0  ;;  %v3083_v10 = vpop.f32.mrf.mxu1  ;;  %v2443_v14 = vmax.f32 %v2411_v28, 0.0  ;;  %v2342_v33 = vadd.f32 %v3081_v50, %v2181_v13  ;;  %v1070_v27 = vmax.f32 %v990_v16, 1.0 }
 0x208   : > { %v2972_v31 = vadd.f32 %v2971_v42, %v2970_v58  ;;  %v3084_v59 = vadd.f32 %v3083_v10, %v3082_v56  ;;  %v1017_v50 = vpop.xlane.xlu0 %1016 }
 0x209   : > { %v2973_v24 = vpop.f32.mrf.mxu0  ;;  %v3085_v19 = vpop.f32.mrf.mxu1  ;;  %2475 = vst [vmem:[%s4524_s17 + $0x90] sm:$0xff] %v2443_v14  ;;  %v2412_v52 = vmul.f32 %v3283_v23, %v2342_v33  ;;  %3294 = vrsqrt.f32 %v1070_v27 }
 0x20a   : > { %v2186_v18 = vadd.f32 %v2972_v31, %v4497_v22  ;;  %v3287_v22 = vpop.eup %3286  ;;  %3296 = vrsqrt.f32 %v1071_v39  ;;  %v1073_v31 = vmax.f32 %v1017_v50, 1.0 }
 0x20b   : > { %v2974_v2 = vpop.f32.mrf.mxu0  ;;  %v3086_v30 = vpop.f32.mrf.mxu1  ;;  %v2444_v3 = vmax.f32 %v2412_v52, 0.0 }
 0x20c   : > { %v2347_v9 = vadd.f32 %v3084_v59, %v2186_v18  ;;  %v2975_v51 = vadd.f32 %v2974_v2, %v2973_v24  ;;  %v3087_v15 = vadd.f32 %v3086_v30, %v3085_v19  ;;  %v3289_v7 = vpop.eup %3288 }
 0x20d   : > { %2476 = vst [vmem:[%s4524_s17 + $0x98] sm:$0xff] %v2444_v3 }
 0x20e   : > { %v2976_v47 = vpop.f32.mrf.mxu0  ;;  %v3088_v54 = vpop.f32.mrf.mxu1  ;;  %v2413_v49 = vmul.f32 %v3285_v8, %v2347_v9  ;;  %v2189_v44 = vadd.f32 %v2975_v51, %v4499_v48 }
 0x20f   : > { %v1008_v48 = vpop.xlane.xlu1 %1007 }
 0x210   : > { %v2977_v61 = vpop.f32.mrf.mxu0  ;;  %v3089_v46 = vpop.f32.mrf.mxu1  ;;  %v2445_v20 = vmax.f32 %v2413_v49, 0.0  ;;  %v2350_v38 = vadd.f32 %v3087_v15, %v2189_v44  ;;  %v1072_v13 = vmax.f32 %v1008_v48, 1.0 }
 0x211   : > { %v2978_v35 = vadd.f32 %v2977_v61, %v2976_v47  ;;  %v3090_v57 = vadd.f32 %v3089_v46, %v3088_v54  ;;  %v1035_v49 = vpop.xlane.xlu0 %1034 }
 0x212   : > { %v2979_v34 = vpop.f32.mrf.mxu0  ;;  %v3091_v1 = vpop.f32.mrf.mxu1  ;;  %2477 = vst [vmem:[%s4524_s17 + $0xa0] sm:$0xff] %v2445_v20  ;;  %v2414_v62 = vmul.f32 %v3287_v22, %v2350_v38  ;;  %3298 = vrsqrt.f32 %v1072_v13  ;;  %v1075_v20 = vmax.f32 %v1035_v49, 1.0 }
 0x213   : > { %v2194_v37 = vadd.f32 %v2978_v35, %v4501_v5  ;;  %v3291_v5 = vpop.eup %3290  ;;  %3300 = vrsqrt.f32 %v1073_v31 }
 0x214   : > { %v2980_v29 = vpop.f32.mrf.mxu0  ;;  %v3092_v45 = vpop.f32.mrf.mxu1  ;;  %v2446_v25 = vmax.f32 %v2414_v62, 0.0 }
 0x215   : > { %v2355_v32 = vadd.f32 %v3090_v57, %v2194_v37  ;;  %v2981_v41 = vadd.f32 %v2980_v29, %v2979_v34  ;;  %v3093_v28 = vadd.f32 %v3092_v45, %v3091_v1  ;;  %v3293_v24 = vpop.eup %3292 }
 0x216   : > { %v3094_v17 = vpop.f32.mrf.mxu1  ;;  %2478 = vst [vmem:[%s4524_s17 + $0xa8] sm:$0xff] %v2446_v25 }
 0x217   : > { %v2982_v40 = vpop.f32.mrf.mxu0  ;;  %v2415_v58 = vmul.f32 %v3289_v7, %v2355_v32  ;;  %v2197_v56 = vadd.f32 %v2981_v41, %v4503_v4  ;;  %v1026_v4 = vpop.xlane.xlu1 %1025 }
 0x218   : > { %v3095_v0 = vpop.f32.mrf.mxu1  ;;  %v1074_v54 = vmax.f32 %v1026_v4, 1.0 }
 0x219   : > { %v2983_v36 = vpop.f32.mrf.mxu0  ;;  %v2447_v23 = vmax.f32 %v2415_v58, 0.0  ;;  %v2358_v42 = vadd.f32 %v3093_v28, %v2197_v56  ;;  %v3096_v8 = vadd.f32 %v3095_v0, %v3094_v17 }
 0x21a   : > { %v2984_v10 = vadd.f32 %v2983_v36, %v2982_v40  ;;  %v3097_v33 = vpop.f32.mrf.mxu1  ;;  %3302 = vrsqrt.f32 %v1074_v54 }
 0x21b   : > { %v2985_v14 = vpop.f32.mrf.mxu0  ;;  %2479 = vst [vmem:[%s4524_s17 + $0xb0] sm:$0xff] %v2447_v23  ;;  %v2416_v19 = vmul.f32 %v3291_v5, %v2358_v42  ;;  %3304 = vrsqrt.f32 %v1075_v20 }
 0x21c   : > { %v2202_v53 = vadd.f32 %v2984_v10, %v4505_v21  ;;  %v3098_v18 = vpop.f32.mrf.mxu1  ;;  %v3295_v21 = vpop.eup %3294 }
 0x21d   : > { %v2986_v52 = vpop.f32.mrf.mxu0  ;;  %v2448_v59 = vmax.f32 %v2416_v19, 0.0  ;;  %v3099_v47 = vadd.f32 %v3098_v18, %v3097_v33  ;;  %v3297_v38 = vpop.eup %3296 }
 0x21e   : > { %v2363_v16 = vadd.f32 %v3096_v8, %v2202_v53  ;;  %v2987_v2 = vadd.f32 %v2986_v52, %v2985_v14 }
 0x21f   : > { %v2988_v30 = vpop.f32.mrf.mxu0  ;;  %v3100_v3 = vpop.f32.mrf.mxu1  ;;  %2480 = vst [vmem:[%s4524_s17 + $0xb8] sm:$0xff] %v2448_v59 }
 0x220   : > { %v2417_v9 = vmul.f32 %v3293_v24, %v2363_v16  ;;  %v2205_v51 = vadd.f32 %v2987_v2, %v4507_v60  ;;  %v1044_v60 = vpop.xlane.xlu1 %1043  ;;  %v3299_v40 = vpop.eup %3298 }
 0x221   : > { %v2989_v44 = vpop.f32.mrf.mxu0  ;;  %v3101_v15 = vpop.f32.mrf.mxu1  ;;  %v1076_v41 = vmax.f32 %v1044_v60, 1.0 }
 0x222   : > { %v2449_v27 = vmax.f32 %v2417_v9, 0.0  ;;  %v2366_v26 = vadd.f32 %v3099_v47, %v2205_v51  ;;  %v2990_v22 = vadd.f32 %v2989_v44, %v2988_v30  ;;  %v3102_v1 = vadd.f32 %v3101_v15, %v3100_v3  ;;  %v3301_v5 = vpop.eup %3300 }
 0x223   : > { %v2991_v61 = vpop.f32.mrf.mxu0  ;;  %v3103_v46 = vpop.f32.mrf.mxu1  ;;  %3306 = vrsqrt.f32 %v1076_v41 }
 0x224   : > { %2481 = vst [vmem:[%s4524_s17 + $0xc0] sm:$0xff] %v2449_v27  ;;  %v2418_v35 = vmul.f32 %v3295_v21, %v2366_v26  ;;  %v2210_v34 = vadd.f32 %v2990_v22, %v4509_v43 }
 0x225   : > { %v2992_v39 = vpop.f32.mrf.mxu0  ;;  %v3104_v7 = vpop.f32.mrf.mxu1 }
 0x226   : > { %v2450_v62 = vmax.f32 %v2418_v35, 0.0  ;;  %v2371_v37 = vadd.f32 %v3102_v1, %v2210_v34  ;;  %v2993_v57 = vadd.f32 %v2992_v39, %v2991_v61  ;;  %v3105_v32 = vadd.f32 %v3104_v7, %v3103_v46 }
 0x227   : > { %v3106_v29 = vpop.f32.mrf.mxu1  ;;  %v3303_v4 = vpop.eup %3302 }
 0x228   : > { %v2994_v48 = vpop.f32.mrf.mxu0  ;;  %2482 = vst [vmem:[%s4524_s17 + $0xc8] sm:$0xff] %v2450_v62  ;;  %v2419_v45 = vmul.f32 %v3297_v38, %v2371_v37  ;;  %v2213_v25 = vadd.f32 %v2993_v57, %v4511_v55  ;;  %v3305_v3 = vpop.eup %3304 }
 0x229   : > { %v3107_v17 = vpop.f32.mrf.mxu1 }
 0x22a   : > { %v2995_v43 = vpop.f32.mrf.mxu0  ;;  %v2451_v58 = vmax.f32 %v2419_v45, 0.0  ;;  %v2374_v56 = vadd.f32 %v3105_v32, %v2213_v25  ;;  %v3108_v23 = vadd.f32 %v3107_v17, %v3106_v29 }
 0x22b   : > { %v2996_v28 = vadd.f32 %v2995_v43, %v2994_v48  ;;  %v3109_v50 = vpop.f32.mrf.mxu1 }
 0x22c   : > { %v2997_v13 = vpop.f32.mrf.mxu0  ;;  %2483 = vst [vmem:[%s4524_s17 + $0xd0] sm:$0xff] %v2451_v58  ;;  %v2420_v36 = vmul.f32 %v3299_v40, %v2374_v56 }
 0x22d   : > { %v2218_v0 = vadd.f32 %v2996_v28, %v4513_v12  ;;  %v3110_v55 = vpop.f32.mrf.mxu1 }
 0x22e   : > { %v2998_v42 = vpop.f32.mrf.mxu0  ;;  %v2452_v10 = vmax.f32 %v2420_v36, 0.0  ;;  %v3111_v8 = vadd.f32 %v3110_v55, %v3109_v50 }
 0x22f   : > { %v2379_v14 = vadd.f32 %v3108_v23, %v2218_v0  ;;  %v2999_v33 = vadd.f32 %v2998_v42, %v2997_v13  ;;  %v3112_v24 = vpop.f32.mrf.mxu1 }
 0x230   : > { %v3000_v31 = vpop.f32.mrf.mxu0  ;;  %2484 = vst [vmem:[%s4524_s17 + $0xd8] sm:$0xff] %v2452_v10  ;;  %v3307_v22 = vpop.eup %3306 }
 0x231   : > { %v2421_v19 = vmul.f32 %v3301_v5, %v2379_v14  ;;  %v2221_v53 = vadd.f32 %v2999_v33, %v4515_v6  ;;  %v3113_v18 = vpop.f32.mrf.mxu1 }
 0x232   : > { %v3001_v52 = vpop.f32.mrf.mxu0  ;;  %v3114_v47 = vadd.f32 %v3113_v18, %v3112_v24 }
 0x233   : > { %v2453_v12 = vmax.f32 %v2421_v19, 0.0  ;;  %v2382_v59 = vadd.f32 %v3111_v8, %v2221_v53  ;;  %v3002_v16 = vadd.f32 %v3001_v52, %v3000_v31  ;;  %v3115_v30 = vpop.f32.mrf.mxu1 }
 0x234   : > { %v3003_v2 = vpop.f32.mrf.mxu0 }
 0x235   : > { %2485 = vst [vmem:[%s4524_s17 + $0xe0] sm:$0xff] %v2453_v12  ;;  %v2422_v9 = vmul.f32 %v3303_v4, %v2382_v59  ;;  %v2226_v51 = vadd.f32 %v3002_v16, %v4517_v11  ;;  %v3116_v54 = vpop.f32.mrf.mxu1 }
 0x236   : > { %v3004_v6 = vpop.f32.mrf.mxu0  ;;  %v3117_v26 = vadd.f32 %v3116_v54, %v3115_v30 }
 0x237   : > { %v2454_v49 = vmax.f32 %v2422_v9, 0.0  ;;  %v2387_v21 = vadd.f32 %v3114_v47, %v2226_v51  ;;  %v3005_v44 = vadd.f32 %v3004_v6, %v3003_v2 }
 0x239   : > { %2486 = vst [vmem:[%s4524_s17 + $0xe8] sm:$0xff] %v2454_v49  ;;  %v2423_v15 = vmul.f32 %v3305_v3, %v2387_v21  ;;  %v2229_v27 = vadd.f32 %v3005_v44, %v4519_v63 }
 0x23b   : > { %v2455_v61 = vmax.f32 %v2423_v15, 0.0  ;;  %v2390_v46 = vadd.f32 %v3117_v26, %v2229_v27 }
 0x23d   : > { %2487 = vst [vmem:[%s4524_s17 + $0xf0] sm:$0xff] %v2455_v61  ;;  %v2424_v11 = vmul.f32 %v3307_v22, %v2390_v46 }
 0x23f   : > { %v2456_v63 = vmax.f32 %v2424_v11, 0.0 }
 0x241   : > { %2488 = vst [vmem:[%s4524_s17 + $0xf8] sm:$0xff] %v2456_v63 }
 0x242   : > { %3397 = shalt.err (!%p3394_p0)
}
 0x243   : > { %s3398_s4 = scalar_lea.hbm %s4592_s20, 4096  ;;  %s3402_s7 = scalar_lea.hbm %s4639_s2, 16384 }
 0x244   : > { %p3399_p5 = scmp.ne.s32.totalorder %s4592_s20, %s3398_s4  ;;  %p3403_p4 = scmp.lt.s32.totalorder %s4592_s20, %s4639_s2 }
 0x245   : > { %p3404_p6 = scmp.lt.s32.totalorder %s3402_s7, %s3398_s4 }
 0x246   : > { %p3400_p9 = pnand %p3399_p5, %p4781_p10 }
 0x247   : > { %p3405_p8 = por %p3404_p6, %p3403_p4 }
 0x248   : > { %p3401_p1 = pneg %p3400_p9 }
 0x24a   : > { %p3406_p3 = pnand %p3405_p8, %p3401_p1 }
 0x24c   : > { %3409 = shalt.err (!%p3406_p3)
}
 0x24d   : > { %s3460_s24 = smov 128   ;;  %s3461_s15 = smov 8  }
 0x24e   : > { %3124 = dma.vmem_to_hbm [thread:$0]  (%p4781_p10), %s4594_s8, 4096, %s4592_s20, %s2490_s26, %s3460_s24, %s3460_s24, %s3461_s15  }
 0x24f PF: > { %p3141_p7 = scmp.ge.s32.totalorder %s3452_s12, 2  ;;  %s2518_s17 = sand.u32 1, %s3440_s9  }
 0x250   : > { %p4782_p2 = scmp.ne.s32.totalorder %s4662_s16, 0  ;;  %s2519_s25 = scalar_lea.sflag [#allocation4], %s2518_s17 }
 0x252   : > { %p3135_p11 = pnand %p3141_p7, %p4782_p2 }
 0x254   : > { %p3136_p12 = pneg %p3135_p11 }
 0x256   : > { %3435 = dma.done.wait (%p3136_p12), %s2519_s25, 4096  }
 0x257   : > { %3437 = vsyncadd (%p3136_p12), %s2519_s25, 4294963200  ;;  %p16_p13 = scmp.ge.s32.totalorder %s3530_s21, 6   ;;  %s4783_s9 = smov %s3444_s10 }
 0x258   : > { %s4784_s10 = smov %s3448_s11  ;;  %s4785_s11 = smov %s3549_s29 }
 0x259   : > { %s4786_s12 = smov %s3530_s21  ;;  %18 = sbr.rel (!%p16_p13) target bundleno = 6 (0x6), region = 77 }
 0x25e   :  { %2524 = vsyncpa [#allocation3], 1 }
 0x25f   :  { %2526 = vsyncpa [#allocation3 + $0x1], 1 }
 0x260   :  { %2527 = vsyncpa [#allocation6], 1 }
 0x261   :  { %2528 = vsyncpa [#allocation4], 1 }
 0x262   :  { %2530 = vsyncpa [#allocation4 + $0x1], 1 }

</bundles_post_ra>
